<compile_context>
chip_gen: v5e
topology: v5e:2x2
jax: 0.10.0
libtpu: 0.0.40
codegen_flags: <defaults>
</compile_context>

<pallas_src>
import functools

import jax
import jax.numpy as jnp
from jax import lax
from jax.experimental import pallas as pl
from jax.experimental.pallas import tpu as pltpu


# ------------------------------ fused kernel ------------------------------------

def _fused_word_attention_kernel(q_in_ref, we_ref, wq_ref, wkv_ref, wo_ref, bo_ref,
                                 noise_ref, o_ref, *, num_heads, dim_head, tau):
    # q_in: (1, NQ, QDIM)   we: (NW, WDIM)   wq: (QDIM, EMB)   wkv: (WDIM, 2*EMB)
    # wo: (EMB, QDIM)       bo: (1, QDIM)    noise: (1, H, NQ, NW)   o: (1, NQ, QDIM)
    emb = num_heads * dim_head
    num_words = we_ref.shape[0]
    scale = dim_head ** (-0.5)

    # --- projections (lane-dense EMB / 2*EMB outputs, single MXU matmuls) ---
    q_all = jnp.dot(q_in_ref[0], wq_ref[...],
                    preferred_element_type=jnp.float32)                 # (NQ, EMB)
    kv = jnp.dot(we_ref[...], wkv_ref[...],
                 preferred_element_type=jnp.float32)                    # (NW, 2*EMB)
    k_all = kv[:, :emb]                                                 # (NW, EMB)
    v_all = kv[:, emb:]                                                 # (NW, EMB)

    # --- per-head hard gumbel-softmax attention (heads statically unrolled) ---
    head_outs = []
    for h in range(num_heads):
        lo, hi = h * dim_head, (h + 1) * dim_head
        q_h = q_all[:, lo:hi]                                           # (NQ, DH)
        k_h = k_all[:, lo:hi]                                           # (NW, DH)
        v_h = v_all[:, lo:hi]                                           # (NW, DH)

        dots = jnp.einsum("qd,kd->qk", q_h, k_h,
                          preferred_element_type=jnp.float32) * scale   # (NQ, NW)
        gumbels = (dots + noise_ref[0, h]) / tau

        # hard gumbel-softmax: forward value is the one-hot of the row-wise argmax
        # (first-occurrence tie-breaking, matching jnp.argmax / torch.max semantics)
        m = jnp.max(gumbels, axis=-1, keepdims=True)
        iota = lax.broadcasted_iota(jnp.int32, gumbels.shape, 1)
        idx = jnp.min(jnp.where(gumbels == m, iota, num_words),
                      axis=-1, keepdims=True)
        attn = (iota == idx).astype(jnp.float32)                        # (NQ, NW)

        head_outs.append(jnp.dot(attn, v_h,
                                 preferred_element_type=jnp.float32))   # (NQ, DH)

    # merge heads lane-dense, then output projection + bias, single (NQ, QDIM) store
    merged = jnp.concatenate(head_outs, axis=-1)                        # (NQ, EMB)
    o_ref[0] = (jnp.dot(merged, wo_ref[...],
                        preferred_element_type=jnp.float32) + bo_ref[...])


# ------------------------------ module forward ----------------------------------

def word_attention_forward(queries, word_emb, Wq, Wk, Wv, Wo, bo, noise,
                           *, num_heads, tau):
    B, NQ, QDIM = queries.shape
    NW, WDIM = word_emb.shape
    EMB = Wq.shape[1]
    DH = EMB // num_heads

    # fuse k/v projections into one matmul (doubles output lane occupancy)
    Wkv = jnp.concatenate([Wk, Wv], axis=1)                             # (WDIM, 2*EMB)
    bo2 = bo.reshape(1, QDIM)

    kernel = functools.partial(_fused_word_attention_kernel,
                               num_heads=num_heads, dim_head=DH, tau=tau)

    return pl.pallas_call(
        kernel,
        out_shape=jax.ShapeDtypeStruct((B, NQ, QDIM), jnp.float32),
        grid=(B,),
        in_specs=[
            pl.BlockSpec((1, NQ, QDIM), lambda b: (b, 0, 0)),           # queries
            pl.BlockSpec((NW, WDIM), lambda b: (0, 0)),                 # word_emb
            pl.BlockSpec((QDIM, EMB), lambda b: (0, 0)),                # Wq
            pl.BlockSpec((WDIM, 2 * EMB), lambda b: (0, 0)),            # [Wk | Wv]
            pl.BlockSpec((EMB, QDIM), lambda b: (0, 0)),                # Wo
            pl.BlockSpec((1, QDIM), lambda b: (0, 0)),                  # bo
            pl.BlockSpec((1, num_heads, NQ, NW), lambda b: (b, 0, 0, 0)),  # noise
        ],
        out_specs=pl.BlockSpec((1, NQ, QDIM), lambda b: (b, 0, 0)),
        compiler_params=pltpu.CompilerParams(
            dimension_semantics=("parallel",)),
    )(queries, word_emb, Wq, Wkv, Wo, bo2, noise)


# ------------------------------ pure-JAX reference -------------------------------

def reference_forward(queries, word_emb, Wq, Wk, Wv, Wo, bo, noise, *, num_heads, tau):
    B, NQ, QDIM = queries.shape
    NW, _ = word_emb.shape
    EMB = Wq.shape[1]
    DH = EMB // num_heads
    scale = DH ** (-0.5)
    q = (queries @ Wq).reshape(B, NQ, num_heads, DH).transpose(0, 2, 1, 3)
    k = (word_emb @ Wk).reshape(NW, num_heads, DH).transpose(1, 0, 2)
    v = (word_emb @ Wv).reshape(NW, num_heads, DH).transpose(1, 0, 2)
    dots = jnp.einsum("bhqd,hkd->bhqk", q, k) * scale
    gumbels = (dots + noise) / tau
    attn = jax.nn.one_hot(jnp.argmax(gumbels, axis=-1), NW, dtype=jnp.float32)
    out = jnp.einsum("bhqk,hkd->bhqd", attn, v)
    out = out.transpose(0, 2, 1, 3).reshape(B, NQ, EMB)
    return out @ Wo + bo


# ----------------------------------- main ----------------------------------------

if __name__ == "__main__":
    B, NQ, QDIM = 2, 8, 32
    EMB, HEADS = 32, 8
    NW, WDIM = 16, 32
    TAU = 1.0

    key = jax.random.PRNGKey(0)
    k1, k2, k3, k4, k5, k6, k7, k8 = jax.random.split(key, 8)

    queries = jax.random.normal(k1, (B, NQ, QDIM), dtype=jnp.float32)
    word_emb = jax.random.normal(k2, (NW, WDIM), dtype=jnp.float32)

    # deterministic parameter init (stored as (in, out) so forward is x @ W)
    Wq = jax.random.normal(k3, (QDIM, EMB), dtype=jnp.float32) * 0.1
    Wk = jax.random.normal(k4, (WDIM, EMB), dtype=jnp.float32) * 0.1
    Wv = jax.random.normal(k5, (WDIM, EMB), dtype=jnp.float32) * 0.1
    Wo = jax.random.normal(k6, (EMB, QDIM), dtype=jnp.float32) * 0.1
    bo = jax.random.normal(k7, (QDIM,), dtype=jnp.float32) * 0.1

    # Gumbel(0,1) noise generated host-side (torch RNG not reproducible in-kernel)
    noise = jax.random.gumbel(k8, (B, HEADS, NQ, NW), dtype=jnp.float32)

    out = word_attention_forward(queries, word_emb, Wq, Wk, Wv, Wo, bo, noise,
                                 num_heads=HEADS, tau=TAU)
    out = jax.block_until_ready(out)

    ref = reference_forward(queries, word_emb, Wq, Wk, Wv, Wo, bo, noise,
                            num_heads=HEADS, tau=TAU)
    assert out.shape == (B, NQ, QDIM)
    assert jnp.allclose(out, ref, atol=1e-4, rtol=1e-4), "mismatch vs reference"
    print("KERNEL_OK")
</pallas_src>

<mosaic_0001>
module attributes {stable_mosaic.version = 11 : i64} {
  func.func @_fused_word_attention_kernel(%arg0: i32, %arg1: memref<1x8x32xf32, #tpu.memory_space<vmem>>, %arg2: memref<16x32xf32, #tpu.memory_space<vmem>>, %arg3: memref<32x32xf32, #tpu.memory_space<vmem>>, %arg4: memref<32x64xf32, #tpu.memory_space<vmem>>, %arg5: memref<32x32xf32, #tpu.memory_space<vmem>>, %arg6: memref<1x32xf32, #tpu.memory_space<vmem>>, %arg7: memref<1x8x8x16xf32, #tpu.memory_space<vmem>>, %arg8: memref<1x8x32xf32, #tpu.memory_space<vmem>>) attributes {dimension_semantics = [#tpu.dimension_semantics<parallel>], iteration_bounds = array<i64: 2>, scalar_prefetch = 0 : i64, scratch_operands = 0 : i64, tpu.core_type = #tpu.core_type<tc>, window_params = [{transform_indices = @transform_0, window_bounds = array<i64: 1, 8, 32>}, {pipeline_mode = #tpu.pipeline_mode<synchronous>, transform_indices = @transform_1, window_bounds = array<i64: 16, 32>}, {pipeline_mode = #tpu.pipeline_mode<synchronous>, transform_indices = @transform_2, window_bounds = array<i64: 32, 32>}, {pipeline_mode = #tpu.pipeline_mode<synchronous>, transform_indices = @transform_3, window_bounds = array<i64: 32, 64>}, {pipeline_mode = #tpu.pipeline_mode<synchronous>, transform_indices = @transform_4, window_bounds = array<i64: 32, 32>}, {pipeline_mode = #tpu.pipeline_mode<synchronous>, transform_indices = @transform_5, window_bounds = array<i64: 1, 32>}, {transform_indices = @transform_6, window_bounds = array<i64: 1, 8, 8, 16>}, {transform_indices = @transform_7, window_bounds = array<i64: 1, 8, 32>}]} {
    %c0 = arith.constant 0 : index
    %c0_0 = arith.constant 0 : index
    %c0_1 = arith.constant 0 : index
    %0 = vector.load %arg1[%c0, %c0_0, %c0_1] : memref<1x8x32xf32, #tpu.memory_space<vmem>>, vector<1x8x32xf32>
    %1 = vector.shape_cast %0 : vector<1x8x32xf32> to vector<8x32xf32>
    %c0_2 = arith.constant 0 : index
    %c0_3 = arith.constant 0 : index
    %2 = vector.load %arg3[%c0_2, %c0_3] : memref<32x32xf32, #tpu.memory_space<vmem>>, vector<32x32xf32>
    %cst = arith.constant dense<0.000000e+00> : vector<8x32xf32>
    %3 = tpu.matmul %1, %2, %cst {dimension_numbers = #tpu.dot_dimension_numbers<[1], [0], [0], [1], [0, 0, 1, 1], [], []>} : vector<8x32xf32>, vector<32x32xf32>, vector<8x32xf32> -> vector<8x32xf32>
    %c0_4 = arith.constant 0 : index
    %c0_5 = arith.constant 0 : index
    %4 = vector.load %arg2[%c0_4, %c0_5] : memref<16x32xf32, #tpu.memory_space<vmem>>, vector<16x32xf32>
    %c0_6 = arith.constant 0 : index
    %c0_7 = arith.constant 0 : index
    %5 = vector.load %arg4[%c0_6, %c0_7] : memref<32x64xf32, #tpu.memory_space<vmem>>, vector<32x64xf32>
    %cst_8 = arith.constant dense<0.000000e+00> : vector<16x64xf32>
    %6 = tpu.matmul %4, %5, %cst_8 {dimension_numbers = #tpu.dot_dimension_numbers<[1], [0], [0], [1], [0, 0, 1, 1], [], []>} : vector<16x32xf32>, vector<32x64xf32>, vector<16x64xf32> -> vector<16x64xf32>
    %7 = vector.extract_strided_slice %6 {offsets = [0, 0], sizes = [16, 32], strides = [1, 1]} : vector<16x64xf32> to vector<16x32xf32>
    %8 = vector.extract_strided_slice %6 {offsets = [0, 32], sizes = [16, 32], strides = [1, 1]} : vector<16x64xf32> to vector<16x32xf32>
    %9 = vector.extract_strided_slice %3 {offsets = [0, 0], sizes = [8, 4], strides = [1, 1]} : vector<8x32xf32> to vector<8x4xf32>
    %10 = vector.extract_strided_slice %7 {offsets = [0, 0], sizes = [16, 4], strides = [1, 1]} : vector<16x32xf32> to vector<16x4xf32>
    %11 = vector.extract_strided_slice %8 {offsets = [0, 0], sizes = [16, 4], strides = [1, 1]} : vector<16x32xf32> to vector<16x4xf32>
    "tpu.trace_start"() <{level = 10 : i32, message = "qd,kd->qk"}> : () -> ()
    %cst_9 = arith.constant dense<0.000000e+00> : vector<8x16xf32>
    %12 = tpu.matmul %9, %10, %cst_9 {dimension_numbers = #tpu.dot_dimension_numbers<[1], [1], [0], [0], [0, 0, 1, 0], [], []>} : vector<8x4xf32>, vector<16x4xf32>, vector<8x16xf32> -> vector<8x16xf32>
    "tpu.trace_stop"() : () -> ()
    %cst_10 = arith.constant 5.000000e-01 : f32
    %13 = vector.broadcast %cst_10 : f32 to vector<8x16xf32>
    %14 = arith.mulf %12, %13 : vector<8x16xf32>
    %c0_11 = arith.constant 0 : index
    %c0_12 = arith.constant 0 : index
    %c0_13 = arith.constant 0 : index
    %c0_14 = arith.constant 0 : index
    %15 = vector.load %arg7[%c0_11, %c0_12, %c0_13, %c0_14] : memref<1x8x8x16xf32, #tpu.memory_space<vmem>>, vector<1x1x8x16xf32>
    %16 = vector.shape_cast %15 : vector<1x1x8x16xf32> to vector<8x16xf32>
    %17 = arith.addf %14, %16 : vector<8x16xf32>
    %cst_15 = arith.constant 1.000000e+00 : f32
    %18 = vector.broadcast %cst_15 : f32 to vector<8x16xf32>
    %19 = arith.divf %17, %18 : vector<8x16xf32>
    %cst_16 = arith.constant dense<0xFF800000> : vector<8xf32>
    %20 = vector.multi_reduction <maximumf>, %19, %cst_16 [1] : vector<8x16xf32> to vector<8xf32>
    %21 = vector.shape_cast %20 : vector<8xf32> to vector<8x1xf32>
    %22 = tpu.iota {dimensions = array<i32: 1>} : vector<8x16xi32>
    %23 = vector.broadcast %21 : vector<8x1xf32> to vector<8x16xf32>
    %24 = arith.cmpf oeq, %19, %23 : vector<8x16xf32>
    %c16_i32 = arith.constant 16 : i32
    %25 = vector.broadcast %c16_i32 : i32 to vector<8x16xi32>
    %26 = arith.select %24, %22, %25 : vector<8x16xi1>, vector<8x16xi32>
    %cst_17 = arith.constant dense<2147483647> : vector<8xi32>
    %27 = vector.multi_reduction <minsi>, %26, %cst_17 [1] : vector<8x16xi32> to vector<8xi32>
    %28 = vector.shape_cast %27 : vector<8xi32> to vector<8x1xi32>
    %29 = vector.broadcast %28 : vector<8x1xi32> to vector<8x16xi32>
    %30 = arith.cmpi eq, %22, %29 : vector<8x16xi32>
    %31 = arith.extui %30 : vector<8x16xi1> to vector<8x16xi32>
    %32 = arith.sitofp %31 : vector<8x16xi32> to vector<8x16xf32>
    %cst_18 = arith.constant dense<0.000000e+00> : vector<8x4xf32>
    %33 = tpu.matmul %32, %11, %cst_18 {dimension_numbers = #tpu.dot_dimension_numbers<[1], [0], [0], [1], [0, 0, 1, 1], [], []>} : vector<8x16xf32>, vector<16x4xf32>, vector<8x4xf32> -> vector<8x4xf32>
    %34 = vector.extract_strided_slice %3 {offsets = [0, 4], sizes = [8, 4], strides = [1, 1]} : vector<8x32xf32> to vector<8x4xf32>
    %35 = vector.extract_strided_slice %7 {offsets = [0, 4], sizes = [16, 4], strides = [1, 1]} : vector<16x32xf32> to vector<16x4xf32>
    %36 = vector.extract_strided_slice %8 {offsets = [0, 4], sizes = [16, 4], strides = [1, 1]} : vector<16x32xf32> to vector<16x4xf32>
    "tpu.trace_start"() <{level = 10 : i32, message = "qd,kd->qk"}> : () -> ()
    %cst_19 = arith.constant dense<0.000000e+00> : vector<8x16xf32>
    %37 = tpu.matmul %34, %35, %cst_19 {dimension_numbers = #tpu.dot_dimension_numbers<[1], [1], [0], [0], [0, 0, 1, 0], [], []>} : vector<8x4xf32>, vector<16x4xf32>, vector<8x16xf32> -> vector<8x16xf32>
    "tpu.trace_stop"() : () -> ()
    %cst_20 = arith.constant 5.000000e-01 : f32
    %38 = vector.broadcast %cst_20 : f32 to vector<8x16xf32>
    %39 = arith.mulf %37, %38 : vector<8x16xf32>
    %c0_21 = arith.constant 0 : index
    %c1 = arith.constant 1 : index
    %c0_22 = arith.constant 0 : index
    %c0_23 = arith.constant 0 : index
    %40 = vector.load %arg7[%c0_21, %c1, %c0_22, %c0_23] : memref<1x8x8x16xf32, #tpu.memory_space<vmem>>, vector<1x1x8x16xf32>
    %41 = vector.shape_cast %40 : vector<1x1x8x16xf32> to vector<8x16xf32>
    %42 = arith.addf %39, %41 : vector<8x16xf32>
    %cst_24 = arith.constant 1.000000e+00 : f32
    %43 = vector.broadcast %cst_24 : f32 to vector<8x16xf32>
    %44 = arith.divf %42, %43 : vector<8x16xf32>
    %cst_25 = arith.constant dense<0xFF800000> : vector<8xf32>
    %45 = vector.multi_reduction <maximumf>, %44, %cst_25 [1] : vector<8x16xf32> to vector<8xf32>
    %46 = vector.shape_cast %45 : vector<8xf32> to vector<8x1xf32>
    %47 = tpu.iota {dimensions = array<i32: 1>} : vector<8x16xi32>
    %48 = vector.broadcast %46 : vector<8x1xf32> to vector<8x16xf32>
    %49 = arith.cmpf oeq, %44, %48 : vector<8x16xf32>
    %c16_i32_26 = arith.constant 16 : i32
    %50 = vector.broadcast %c16_i32_26 : i32 to vector<8x16xi32>
    %51 = arith.select %49, %47, %50 : vector<8x16xi1>, vector<8x16xi32>
    %cst_27 = arith.constant dense<2147483647> : vector<8xi32>
    %52 = vector.multi_reduction <minsi>, %51, %cst_27 [1] : vector<8x16xi32> to vector<8xi32>
    %53 = vector.shape_cast %52 : vector<8xi32> to vector<8x1xi32>
    %54 = vector.broadcast %53 : vector<8x1xi32> to vector<8x16xi32>
    %55 = arith.cmpi eq, %47, %54 : vector<8x16xi32>
    %56 = arith.extui %55 : vector<8x16xi1> to vector<8x16xi32>
    %57 = arith.sitofp %56 : vector<8x16xi32> to vector<8x16xf32>
    %cst_28 = arith.constant dense<0.000000e+00> : vector<8x4xf32>
    %58 = tpu.matmul %57, %36, %cst_28 {dimension_numbers = #tpu.dot_dimension_numbers<[1], [0], [0], [1], [0, 0, 1, 1], [], []>} : vector<8x16xf32>, vector<16x4xf32>, vector<8x4xf32> -> vector<8x4xf32>
    %59 = vector.extract_strided_slice %3 {offsets = [0, 8], sizes = [8, 4], strides = [1, 1]} : vector<8x32xf32> to vector<8x4xf32>
    %60 = vector.extract_strided_slice %7 {offsets = [0, 8], sizes = [16, 4], strides = [1, 1]} : vector<16x32xf32> to vector<16x4xf32>
    %61 = vector.extract_strided_slice %8 {offsets = [0, 8], sizes = [16, 4], strides = [1, 1]} : vector<16x32xf32> to vector<16x4xf32>
    "tpu.trace_start"() <{level = 10 : i32, message = "qd,kd->qk"}> : () -> ()
    %cst_29 = arith.constant dense<0.000000e+00> : vector<8x16xf32>
    %62 = tpu.matmul %59, %60, %cst_29 {dimension_numbers = #tpu.dot_dimension_numbers<[1], [1], [0], [0], [0, 0, 1, 0], [], []>} : vector<8x4xf32>, vector<16x4xf32>, vector<8x16xf32> -> vector<8x16xf32>
    "tpu.trace_stop"() : () -> ()
    %cst_30 = arith.constant 5.000000e-01 : f32
    %63 = vector.broadcast %cst_30 : f32 to vector<8x16xf32>
    %64 = arith.mulf %62, %63 : vector<8x16xf32>
    %c0_31 = arith.constant 0 : index
    %c2 = arith.constant 2 : index
    %c0_32 = arith.constant 0 : index
    %c0_33 = arith.constant 0 : index
    %65 = vector.load %arg7[%c0_31, %c2, %c0_32, %c0_33] : memref<1x8x8x16xf32, #tpu.memory_space<vmem>>, vector<1x1x8x16xf32>
    %66 = vector.shape_cast %65 : vector<1x1x8x16xf32> to vector<8x16xf32>
    %67 = arith.addf %64, %66 : vector<8x16xf32>
    %cst_34 = arith.constant 1.000000e+00 : f32
    %68 = vector.broadcast %cst_34 : f32 to vector<8x16xf32>
    %69 = arith.divf %67, %68 : vector<8x16xf32>
    %cst_35 = arith.constant dense<0xFF800000> : vector<8xf32>
    %70 = vector.multi_reduction <maximumf>, %69, %cst_35 [1] : vector<8x16xf32> to vector<8xf32>
    %71 = vector.shape_cast %70 : vector<8xf32> to vector<8x1xf32>
    %72 = tpu.iota {dimensions = array<i32: 1>} : vector<8x16xi32>
    %73 = vector.broadcast %71 : vector<8x1xf32> to vector<8x16xf32>
    %74 = arith.cmpf oeq, %69, %73 : vector<8x16xf32>
    %c16_i32_36 = arith.constant 16 : i32
    %75 = vector.broadcast %c16_i32_36 : i32 to vector<8x16xi32>
    %76 = arith.select %74, %72, %75 : vector<8x16xi1>, vector<8x16xi32>
    %cst_37 = arith.constant dense<2147483647> : vector<8xi32>
    %77 = vector.multi_reduction <minsi>, %76, %cst_37 [1] : vector<8x16xi32> to vector<8xi32>
    %78 = vector.shape_cast %77 : vector<8xi32> to vector<8x1xi32>
    %79 = vector.broadcast %78 : vector<8x1xi32> to vector<8x16xi32>
    %80 = arith.cmpi eq, %72, %79 : vector<8x16xi32>
    %81 = arith.extui %80 : vector<8x16xi1> to vector<8x16xi32>
    %82 = arith.sitofp %81 : vector<8x16xi32> to vector<8x16xf32>
    %cst_38 = arith.constant dense<0.000000e+00> : vector<8x4xf32>
    %83 = tpu.matmul %82, %61, %cst_38 {dimension_numbers = #tpu.dot_dimension_numbers<[1], [0], [0], [1], [0, 0, 1, 1], [], []>} : vector<8x16xf32>, vector<16x4xf32>, vector<8x4xf32> -> vector<8x4xf32>
    %84 = vector.extract_strided_slice %3 {offsets = [0, 12], sizes = [8, 4], strides = [1, 1]} : vector<8x32xf32> to vector<8x4xf32>
    %85 = vector.extract_strided_slice %7 {offsets = [0, 12], sizes = [16, 4], strides = [1, 1]} : vector<16x32xf32> to vector<16x4xf32>
    %86 = vector.extract_strided_slice %8 {offsets = [0, 12], sizes = [16, 4], strides = [1, 1]} : vector<16x32xf32> to vector<16x4xf32>
    "tpu.trace_start"() <{level = 10 : i32, message = "qd,kd->qk"}> : () -> ()
    %cst_39 = arith.constant dense<0.000000e+00> : vector<8x16xf32>
    %87 = tpu.matmul %84, %85, %cst_39 {dimension_numbers = #tpu.dot_dimension_numbers<[1], [1], [0], [0], [0, 0, 1, 0], [], []>} : vector<8x4xf32>, vector<16x4xf32>, vector<8x16xf32> -> vector<8x16xf32>
    "tpu.trace_stop"() : () -> ()
    %cst_40 = arith.constant 5.000000e-01 : f32
    %88 = vector.broadcast %cst_40 : f32 to vector<8x16xf32>
    %89 = arith.mulf %87, %88 : vector<8x16xf32>
    %c0_41 = arith.constant 0 : index
    %c3 = arith.constant 3 : index
    %c0_42 = arith.constant 0 : index
    %c0_43 = arith.constant 0 : index
    %90 = vector.load %arg7[%c0_41, %c3, %c0_42, %c0_43] : memref<1x8x8x16xf32, #tpu.memory_space<vmem>>, vector<1x1x8x16xf32>
    %91 = vector.shape_cast %90 : vector<1x1x8x16xf32> to vector<8x16xf32>
    %92 = arith.addf %89, %91 : vector<8x16xf32>
    %cst_44 = arith.constant 1.000000e+00 : f32
    %93 = vector.broadcast %cst_44 : f32 to vector<8x16xf32>
    %94 = arith.divf %92, %93 : vector<8x16xf32>
    %cst_45 = arith.constant dense<0xFF800000> : vector<8xf32>
    %95 = vector.multi_reduction <maximumf>, %94, %cst_45 [1] : vector<8x16xf32> to vector<8xf32>
    %96 = vector.shape_cast %95 : vector<8xf32> to vector<8x1xf32>
    %97 = tpu.iota {dimensions = array<i32: 1>} : vector<8x16xi32>
    %98 = vector.broadcast %96 : vector<8x1xf32> to vector<8x16xf32>
    %99 = arith.cmpf oeq, %94, %98 : vector<8x16xf32>
    %c16_i32_46 = arith.constant 16 : i32
    %100 = vector.broadcast %c16_i32_46 : i32 to vector<8x16xi32>
    %101 = arith.select %99, %97, %100 : vector<8x16xi1>, vector<8x16xi32>
    %cst_47 = arith.constant dense<2147483647> : vector<8xi32>
    %102 = vector.multi_reduction <minsi>, %101, %cst_47 [1] : vector<8x16xi32> to vector<8xi32>
    %103 = vector.shape_cast %102 : vector<8xi32> to vector<8x1xi32>
    %104 = vector.broadcast %103 : vector<8x1xi32> to vector<8x16xi32>
    %105 = arith.cmpi eq, %97, %104 : vector<8x16xi32>
    %106 = arith.extui %105 : vector<8x16xi1> to vector<8x16xi32>
    %107 = arith.sitofp %106 : vector<8x16xi32> to vector<8x16xf32>
    %cst_48 = arith.constant dense<0.000000e+00> : vector<8x4xf32>
    %108 = tpu.matmul %107, %86, %cst_48 {dimension_numbers = #tpu.dot_dimension_numbers<[1], [0], [0], [1], [0, 0, 1, 1], [], []>} : vector<8x16xf32>, vector<16x4xf32>, vector<8x4xf32> -> vector<8x4xf32>
    %109 = vector.extract_strided_slice %3 {offsets = [0, 16], sizes = [8, 4], strides = [1, 1]} : vector<8x32xf32> to vector<8x4xf32>
    %110 = vector.extract_strided_slice %7 {offsets = [0, 16], sizes = [16, 4], strides = [1, 1]} : vector<16x32xf32> to vector<16x4xf32>
    %111 = vector.extract_strided_slice %8 {offsets = [0, 16], sizes = [16, 4], strides = [1, 1]} : vector<16x32xf32> to vector<16x4xf32>
    "tpu.trace_start"() <{level = 10 : i32, message = "qd,kd->qk"}> : () -> ()
    %cst_49 = arith.constant dense<0.000000e+00> : vector<8x16xf32>
    %112 = tpu.matmul %109, %110, %cst_49 {dimension_numbers = #tpu.dot_dimension_numbers<[1], [1], [0], [0], [0, 0, 1, 0], [], []>} : vector<8x4xf32>, vector<16x4xf32>, vector<8x16xf32> -> vector<8x16xf32>
    "tpu.trace_stop"() : () -> ()
    %cst_50 = arith.constant 5.000000e-01 : f32
    %113 = vector.broadcast %cst_50 : f32 to vector<8x16xf32>
    %114 = arith.mulf %112, %113 : vector<8x16xf32>
    %c0_51 = arith.constant 0 : index
    %c4 = arith.constant 4 : index
    %c0_52 = arith.constant 0 : index
    %c0_53 = arith.constant 0 : index
    %115 = vector.load %arg7[%c0_51, %c4, %c0_52, %c0_53] : memref<1x8x8x16xf32, #tpu.memory_space<vmem>>, vector<1x1x8x16xf32>
    %116 = vector.shape_cast %115 : vector<1x1x8x16xf32> to vector<8x16xf32>
    %117 = arith.addf %114, %116 : vector<8x16xf32>
    %cst_54 = arith.constant 1.000000e+00 : f32
    %118 = vector.broadcast %cst_54 : f32 to vector<8x16xf32>
    %119 = arith.divf %117, %118 : vector<8x16xf32>
    %cst_55 = arith.constant dense<0xFF800000> : vector<8xf32>
    %120 = vector.multi_reduction <maximumf>, %119, %cst_55 [1] : vector<8x16xf32> to vector<8xf32>
    %121 = vector.shape_cast %120 : vector<8xf32> to vector<8x1xf32>
    %122 = tpu.iota {dimensions = array<i32: 1>} : vector<8x16xi32>
    %123 = vector.broadcast %121 : vector<8x1xf32> to vector<8x16xf32>
    %124 = arith.cmpf oeq, %119, %123 : vector<8x16xf32>
    %c16_i32_56 = arith.constant 16 : i32
    %125 = vector.broadcast %c16_i32_56 : i32 to vector<8x16xi32>
    %126 = arith.select %124, %122, %125 : vector<8x16xi1>, vector<8x16xi32>
    %cst_57 = arith.constant dense<2147483647> : vector<8xi32>
    %127 = vector.multi_reduction <minsi>, %126, %cst_57 [1] : vector<8x16xi32> to vector<8xi32>
    %128 = vector.shape_cast %127 : vector<8xi32> to vector<8x1xi32>
    %129 = vector.broadcast %128 : vector<8x1xi32> to vector<8x16xi32>
    %130 = arith.cmpi eq, %122, %129 : vector<8x16xi32>
    %131 = arith.extui %130 : vector<8x16xi1> to vector<8x16xi32>
    %132 = arith.sitofp %131 : vector<8x16xi32> to vector<8x16xf32>
    %cst_58 = arith.constant dense<0.000000e+00> : vector<8x4xf32>
    %133 = tpu.matmul %132, %111, %cst_58 {dimension_numbers = #tpu.dot_dimension_numbers<[1], [0], [0], [1], [0, 0, 1, 1], [], []>} : vector<8x16xf32>, vector<16x4xf32>, vector<8x4xf32> -> vector<8x4xf32>
    %134 = vector.extract_strided_slice %3 {offsets = [0, 20], sizes = [8, 4], strides = [1, 1]} : vector<8x32xf32> to vector<8x4xf32>
    %135 = vector.extract_strided_slice %7 {offsets = [0, 20], sizes = [16, 4], strides = [1, 1]} : vector<16x32xf32> to vector<16x4xf32>
    %136 = vector.extract_strided_slice %8 {offsets = [0, 20], sizes = [16, 4], strides = [1, 1]} : vector<16x32xf32> to vector<16x4xf32>
    "tpu.trace_start"() <{level = 10 : i32, message = "qd,kd->qk"}> : () -> ()
    %cst_59 = arith.constant dense<0.000000e+00> : vector<8x16xf32>
    %137 = tpu.matmul %134, %135, %cst_59 {dimension_numbers = #tpu.dot_dimension_numbers<[1], [1], [0], [0], [0, 0, 1, 0], [], []>} : vector<8x4xf32>, vector<16x4xf32>, vector<8x16xf32> -> vector<8x16xf32>
    "tpu.trace_stop"() : () -> ()
    %cst_60 = arith.constant 5.000000e-01 : f32
    %138 = vector.broadcast %cst_60 : f32 to vector<8x16xf32>
    %139 = arith.mulf %137, %138 : vector<8x16xf32>
    %c0_61 = arith.constant 0 : index
    %c5 = arith.constant 5 : index
    %c0_62 = arith.constant 0 : index
    %c0_63 = arith.constant 0 : index
    %140 = vector.load %arg7[%c0_61, %c5, %c0_62, %c0_63] : memref<1x8x8x16xf32, #tpu.memory_space<vmem>>, vector<1x1x8x16xf32>
    %141 = vector.shape_cast %140 : vector<1x1x8x16xf32> to vector<8x16xf32>
    %142 = arith.addf %139, %141 : vector<8x16xf32>
    %cst_64 = arith.constant 1.000000e+00 : f32
    %143 = vector.broadcast %cst_64 : f32 to vector<8x16xf32>
    %144 = arith.divf %142, %143 : vector<8x16xf32>
    %cst_65 = arith.constant dense<0xFF800000> : vector<8xf32>
    %145 = vector.multi_reduction <maximumf>, %144, %cst_65 [1] : vector<8x16xf32> to vector<8xf32>
    %146 = vector.shape_cast %145 : vector<8xf32> to vector<8x1xf32>
    %147 = tpu.iota {dimensions = array<i32: 1>} : vector<8x16xi32>
    %148 = vector.broadcast %146 : vector<8x1xf32> to vector<8x16xf32>
    %149 = arith.cmpf oeq, %144, %148 : vector<8x16xf32>
    %c16_i32_66 = arith.constant 16 : i32
    %150 = vector.broadcast %c16_i32_66 : i32 to vector<8x16xi32>
    %151 = arith.select %149, %147, %150 : vector<8x16xi1>, vector<8x16xi32>
    %cst_67 = arith.constant dense<2147483647> : vector<8xi32>
    %152 = vector.multi_reduction <minsi>, %151, %cst_67 [1] : vector<8x16xi32> to vector<8xi32>
    %153 = vector.shape_cast %152 : vector<8xi32> to vector<8x1xi32>
    %154 = vector.broadcast %153 : vector<8x1xi32> to vector<8x16xi32>
    %155 = arith.cmpi eq, %147, %154 : vector<8x16xi32>
    %156 = arith.extui %155 : vector<8x16xi1> to vector<8x16xi32>
    %157 = arith.sitofp %156 : vector<8x16xi32> to vector<8x16xf32>
    %cst_68 = arith.constant dense<0.000000e+00> : vector<8x4xf32>
    %158 = tpu.matmul %157, %136, %cst_68 {dimension_numbers = #tpu.dot_dimension_numbers<[1], [0], [0], [1], [0, 0, 1, 1], [], []>} : vector<8x16xf32>, vector<16x4xf32>, vector<8x4xf32> -> vector<8x4xf32>
    %159 = vector.extract_strided_slice %3 {offsets = [0, 24], sizes = [8, 4], strides = [1, 1]} : vector<8x32xf32> to vector<8x4xf32>
    %160 = vector.extract_strided_slice %7 {offsets = [0, 24], sizes = [16, 4], strides = [1, 1]} : vector<16x32xf32> to vector<16x4xf32>
    %161 = vector.extract_strided_slice %8 {offsets = [0, 24], sizes = [16, 4], strides = [1, 1]} : vector<16x32xf32> to vector<16x4xf32>
    "tpu.trace_start"() <{level = 10 : i32, message = "qd,kd->qk"}> : () -> ()
    %cst_69 = arith.constant dense<0.000000e+00> : vector<8x16xf32>
    %162 = tpu.matmul %159, %160, %cst_69 {dimension_numbers = #tpu.dot_dimension_numbers<[1], [1], [0], [0], [0, 0, 1, 0], [], []>} : vector<8x4xf32>, vector<16x4xf32>, vector<8x16xf32> -> vector<8x16xf32>
    "tpu.trace_stop"() : () -> ()
    %cst_70 = arith.constant 5.000000e-01 : f32
    %163 = vector.broadcast %cst_70 : f32 to vector<8x16xf32>
    %164 = arith.mulf %162, %163 : vector<8x16xf32>
    %c0_71 = arith.constant 0 : index
    %c6 = arith.constant 6 : index
    %c0_72 = arith.constant 0 : index
    %c0_73 = arith.constant 0 : index
    %165 = vector.load %arg7[%c0_71, %c6, %c0_72, %c0_73] : memref<1x8x8x16xf32, #tpu.memory_space<vmem>>, vector<1x1x8x16xf32>
    %166 = vector.shape_cast %165 : vector<1x1x8x16xf32> to vector<8x16xf32>
    %167 = arith.addf %164, %166 : vector<8x16xf32>
    %cst_74 = arith.constant 1.000000e+00 : f32
    %168 = vector.broadcast %cst_74 : f32 to vector<8x16xf32>
    %169 = arith.divf %167, %168 : vector<8x16xf32>
    %cst_75 = arith.constant dense<0xFF800000> : vector<8xf32>
    %170 = vector.multi_reduction <maximumf>, %169, %cst_75 [1] : vector<8x16xf32> to vector<8xf32>
    %171 = vector.shape_cast %170 : vector<8xf32> to vector<8x1xf32>
    %172 = tpu.iota {dimensions = array<i32: 1>} : vector<8x16xi32>
    %173 = vector.broadcast %171 : vector<8x1xf32> to vector<8x16xf32>
    %174 = arith.cmpf oeq, %169, %173 : vector<8x16xf32>
    %c16_i32_76 = arith.constant 16 : i32
    %175 = vector.broadcast %c16_i32_76 : i32 to vector<8x16xi32>
    %176 = arith.select %174, %172, %175 : vector<8x16xi1>, vector<8x16xi32>
    %cst_77 = arith.constant dense<2147483647> : vector<8xi32>
    %177 = vector.multi_reduction <minsi>, %176, %cst_77 [1] : vector<8x16xi32> to vector<8xi32>
    %178 = vector.shape_cast %177 : vector<8xi32> to vector<8x1xi32>
    %179 = vector.broadcast %178 : vector<8x1xi32> to vector<8x16xi32>
    %180 = arith.cmpi eq, %172, %179 : vector<8x16xi32>
    %181 = arith.extui %180 : vector<8x16xi1> to vector<8x16xi32>
    %182 = arith.sitofp %181 : vector<8x16xi32> to vector<8x16xf32>
    %cst_78 = arith.constant dense<0.000000e+00> : vector<8x4xf32>
    %183 = tpu.matmul %182, %161, %cst_78 {dimension_numbers = #tpu.dot_dimension_numbers<[1], [0], [0], [1], [0, 0, 1, 1], [], []>} : vector<8x16xf32>, vector<16x4xf32>, vector<8x4xf32> -> vector<8x4xf32>
    %184 = vector.extract_strided_slice %3 {offsets = [0, 28], sizes = [8, 4], strides = [1, 1]} : vector<8x32xf32> to vector<8x4xf32>
    %185 = vector.extract_strided_slice %7 {offsets = [0, 28], sizes = [16, 4], strides = [1, 1]} : vector<16x32xf32> to vector<16x4xf32>
    %186 = vector.extract_strided_slice %8 {offsets = [0, 28], sizes = [16, 4], strides = [1, 1]} : vector<16x32xf32> to vector<16x4xf32>
    "tpu.trace_start"() <{level = 10 : i32, message = "qd,kd->qk"}> : () -> ()
    %cst_79 = arith.constant dense<0.000000e+00> : vector<8x16xf32>
    %187 = tpu.matmul %184, %185, %cst_79 {dimension_numbers = #tpu.dot_dimension_numbers<[1], [1], [0], [0], [0, 0, 1, 0], [], []>} : vector<8x4xf32>, vector<16x4xf32>, vector<8x16xf32> -> vector<8x16xf32>
    "tpu.trace_stop"() : () -> ()
    %cst_80 = arith.constant 5.000000e-01 : f32
    %188 = vector.broadcast %cst_80 : f32 to vector<8x16xf32>
    %189 = arith.mulf %187, %188 : vector<8x16xf32>
    %c0_81 = arith.constant 0 : index
    %c7 = arith.constant 7 : index
    %c0_82 = arith.constant 0 : index
    %c0_83 = arith.constant 0 : index
    %190 = vector.load %arg7[%c0_81, %c7, %c0_82, %c0_83] : memref<1x8x8x16xf32, #tpu.memory_space<vmem>>, vector<1x1x8x16xf32>
    %191 = vector.shape_cast %190 : vector<1x1x8x16xf32> to vector<8x16xf32>
    %192 = arith.addf %189, %191 : vector<8x16xf32>
    %cst_84 = arith.constant 1.000000e+00 : f32
    %193 = vector.broadcast %cst_84 : f32 to vector<8x16xf32>
    %194 = arith.divf %192, %193 : vector<8x16xf32>
    %cst_85 = arith.constant dense<0xFF800000> : vector<8xf32>
    %195 = vector.multi_reduction <maximumf>, %194, %cst_85 [1] : vector<8x16xf32> to vector<8xf32>
    %196 = vector.shape_cast %195 : vector<8xf32> to vector<8x1xf32>
    %197 = tpu.iota {dimensions = array<i32: 1>} : vector<8x16xi32>
    %198 = vector.broadcast %196 : vector<8x1xf32> to vector<8x16xf32>
    %199 = arith.cmpf oeq, %194, %198 : vector<8x16xf32>
    %c16_i32_86 = arith.constant 16 : i32
    %200 = vector.broadcast %c16_i32_86 : i32 to vector<8x16xi32>
    %201 = arith.select %199, %197, %200 : vector<8x16xi1>, vector<8x16xi32>
    %cst_87 = arith.constant dense<2147483647> : vector<8xi32>
    %202 = vector.multi_reduction <minsi>, %201, %cst_87 [1] : vector<8x16xi32> to vector<8xi32>
    %203 = vector.shape_cast %202 : vector<8xi32> to vector<8x1xi32>
    %204 = vector.broadcast %203 : vector<8x1xi32> to vector<8x16xi32>
    %205 = arith.cmpi eq, %197, %204 : vector<8x16xi32>
    %206 = arith.extui %205 : vector<8x16xi1> to vector<8x16xi32>
    %207 = arith.sitofp %206 : vector<8x16xi32> to vector<8x16xf32>
    %cst_88 = arith.constant dense<0.000000e+00> : vector<8x4xf32>
    %208 = tpu.matmul %207, %186, %cst_88 {dimension_numbers = #tpu.dot_dimension_numbers<[1], [0], [0], [1], [0, 0, 1, 1], [], []>} : vector<8x16xf32>, vector<16x4xf32>, vector<8x4xf32> -> vector<8x4xf32>
    %209 = tpu.concatenate %33, %58, %83, %108, %133, %158, %183, %208 in 1 : vector<8x4xf32>, vector<8x4xf32>, vector<8x4xf32>, vector<8x4xf32>, vector<8x4xf32>, vector<8x4xf32>, vector<8x4xf32>, vector<8x4xf32> -> vector<8x32xf32>
    %c0_89 = arith.constant 0 : index
    %c0_90 = arith.constant 0 : index
    %210 = vector.load %arg5[%c0_89, %c0_90] : memref<32x32xf32, #tpu.memory_space<vmem>>, vector<32x32xf32>
    %cst_91 = arith.constant dense<0.000000e+00> : vector<8x32xf32>
    %211 = tpu.matmul %209, %210, %cst_91 {dimension_numbers = #tpu.dot_dimension_numbers<[1], [0], [0], [1], [0, 0, 1, 1], [], []>} : vector<8x32xf32>, vector<32x32xf32>, vector<8x32xf32> -> vector<8x32xf32>
    %c0_92 = arith.constant 0 : index
    %c0_93 = arith.constant 0 : index
    %212 = vector.load %arg6[%c0_92, %c0_93] : memref<1x32xf32, #tpu.memory_space<vmem>>, vector<1x32xf32>
    %213 = vector.broadcast %212 : vector<1x32xf32> to vector<8x32xf32>
    %214 = arith.addf %211, %213 : vector<8x32xf32>
    %c0_94 = arith.constant 0 : index
    %c0_95 = arith.constant 0 : index
    %c0_96 = arith.constant 0 : index
    %215 = vector.load %arg8[%c0_94, %c0_95, %c0_96] : memref<1x8x32xf32, #tpu.memory_space<vmem>>, vector<1x8x32xf32>
    %216 = vector.shape_cast %215 : vector<1x8x32xf32> to vector<8x32xf32>
    %217 = vector.shape_cast %214 : vector<8x32xf32> to vector<1x8x32xf32>
    tpu.vector_store %arg8[%c0_94, %c0_95, %c0_96], %217 {strides = array<i32>} : memref<1x8x32xf32, #tpu.memory_space<vmem>>, vector<1x8x32xf32>,
    return
  }
  func.func @transform_0(%arg0: i32) -> (i32, i32, i32) {
    %c0_i32 = arith.constant 0 : i32
    %c0_i32_0 = arith.constant 0 : i32
    %c0_i32_1 = arith.constant 0 : i32
    return %arg0, %c0_i32, %c0_i32_0 : i32, i32, i32
  }
  func.func @transform_1(%arg0: i32) -> (i32, i32) {
    %c0_i32 = arith.constant 0 : i32
    %c0_i32_0 = arith.constant 0 : i32
    %c0_i32_1 = arith.constant 0 : i32
    return %c0_i32, %c0_i32_0 : i32, i32
  }
  func.func @transform_2(%arg0: i32) -> (i32, i32) {
    %c0_i32 = arith.constant 0 : i32
    %c0_i32_0 = arith.constant 0 : i32
    %c0_i32_1 = arith.constant 0 : i32
    return %c0_i32, %c0_i32_0 : i32, i32
  }
  func.func @transform_3(%arg0: i32) -> (i32, i32) {
    %c0_i32 = arith.constant 0 : i32
    %c0_i32_0 = arith.constant 0 : i32
    %c0_i32_1 = arith.constant 0 : i32
    return %c0_i32, %c0_i32_0 : i32, i32
  }
  func.func @transform_4(%arg0: i32) -> (i32, i32) {
    %c0_i32 = arith.constant 0 : i32
    %c0_i32_0 = arith.constant 0 : i32
    %c0_i32_1 = arith.constant 0 : i32
    return %c0_i32, %c0_i32_0 : i32, i32
  }
  func.func @transform_5(%arg0: i32) -> (i32, i32) {
    %c0_i32 = arith.constant 0 : i32
    %c0_i32_0 = arith.constant 0 : i32
    %c0_i32_1 = arith.constant 0 : i32
    return %c0_i32, %c0_i32_0 : i32, i32
  }
  func.func @transform_6(%arg0: i32) -> (i32, i32, i32, i32) {
    %c0_i32 = arith.constant 0 : i32
    %c0_i32_0 = arith.constant 0 : i32
    %c0_i32_1 = arith.constant 0 : i32
    %c0_i32_2 = arith.constant 0 : i32
    return %arg0, %c0_i32, %c0_i32_0, %c0_i32_1 : i32, i32, i32, i32
  }
  func.func @transform_7(%arg0: i32) -> (i32, i32, i32) {
    %c0_i32 = arith.constant 0 : i32
    %c0_i32_0 = arith.constant 0 : i32
    %c0_i32_1 = arith.constant 0 : i32
    return %arg0, %c0_i32, %c0_i32_0 : i32, i32, i32
  }
}

</mosaic_0001>

<bundles_post_ra>
// kernel: tpu_custom_call.1
= control target key start
LH: loop header
LB: loop body
LE: loop exit
PB: predicated region body
PF: predicated region fallthrough
CT: control target
= control target key end

     0   :  { %s2347_s0 = inlined_call_operand.hbm [shape: f32[2,8,32], index: 0, kind: input, shape index: {}]   ;;  %s2348_s1 = inlined_call_operand.hbm [shape: f32[16,32], index: 1, kind: input, shape index: {}]   ;;  %s2349_s2 = inlined_call_operand.hbm [shape: f32[32,32], index: 2, kind: input, shape index: {}]   ;;  %s2350_s3 = inlined_call_operand.hbm [shape: f32[32,64], index: 3, kind: input, shape index: {}]   ;;  %s2351_s4 = inlined_call_operand.hbm [shape: f32[32,32], index: 4, kind: input, shape index: {}]   ;;  %s2352_s5 = inlined_call_operand.vmem [shape: f32[1,32], index: 5, kind: input, shape index: {}]   ;;  %s2353_s6 = inlined_call_operand.hbm [shape: f32[2,8,8,16], index: 6, kind: input, shape index: {}]   ;;  %s2354_s7 = inlined_call_operand.hbm [shape: f32[2,8,32], index: 7, kind: output, shape index: {}]  }
   0x1   :  { %2357 = sst [smem:[#allocation20_spill]] %s2348_s1 }
   0x2   :  { %2358 = sst [smem:[#allocation21_spill]] %s2349_s2 }
   0x3   :  { %2359 = sst [smem:[#allocation22_spill]] %s2350_s3 }
   0x4   :  { %2360 = sst [smem:[#allocation23_spill]] %s2351_s4 }
   0x5   :  { %12 = vsyncpa [#allocation3], 0 }
   0x6   :  { %14 = vsyncpa [#allocation3 + $0x1], 0 }
   0x7   :  { %15 = vsyncpa [#allocation6], 0 }
   0x8   :  { %16 = vsyncpa [#allocation9], 0 }
   0x9   :  { %17 = vsyncpa [#allocation12], 0 }
   0xa   :  { %19 = vsyncpa [#allocation12 + $0x1], 0 }
   0xb   :  { %20 = vsyncpa [#allocation4], 0 }
   0xc   :  { %22 = vsyncpa [#allocation4 + $0x1], 0  ;;  %s1954_s24 = smov 0   ;;  %s1956_s25 = smov 0  }
   0xd   :  { %s1958_s26 = smov 0   ;;  %s1960_s27 = smov 0  }
   0xe LB: > { %s2361_s1 = sld [smem:[#allocation20_spill]]  ;;  %s1978_s8 = sadd.s32 4294967295, %s1883_s27   ;;  %s1883_s27 = sphi %s1960_s27, %s2380_s27   ;;  %s1879_s26 = sphi %s1958_s26, %s2379_s26   ;;  %s1875_s25 = sphi %s1956_s25, %s2378_s25   ;;  %s1871_s24 = sphi %s1954_s24, %s2377_s24  }
   0xf   : > { %p1392_p0 = scmp.ge.s32.totalorder %s1883_s27, 1  ;;  %p49_p1 = scmp.eq.s32.totalorder %s1978_s8, 0 }
  0x10   : > { %p216_p2 = scmp.lt.s32.totalorder %s1883_s27, 3  ;;  %s1885_s10 = smov [#allocation5]  }
  0x11   : > { %s229_s11 = sshll.u32 %s1885_s10, 4  ;;  %s2363_s3 = sld [smem:[#allocation22_spill]]  ;;  %s230_s11 = int_to_ptr.vmem [resolvable:$true] %s229_s11 }
  0x12   : > { %p1983_p3 = pnand %p1392_p0, %p216_p2  ;;  %s2365_s2 = sld [smem:[#allocation21_spill]] }
  0x13   : > { %s1886_s19 = smov [#allocation8]   ;;  %s2355_s21 = smov 128  }
  0x14   : > { %s227_s30 = sshll.u32 %s2361_s1, 4  ;;  %p1489_p4 = pneg %p1983_p3  ;;  %s228_s30 = int_to_ptr.hbm [resolvable:$true] %s227_s30 }
  0x15   : > { %s257_s20 = sshll.u32 %s1886_s19, 4  ;;  %s2356_s22 = smov 8   ;;  %s258_s20 = int_to_ptr.vmem [resolvable:$true] %s257_s20 }
  0x16   : > { %p1995_p6 = pnand %p1489_p4, %p49_p1  ;;  %s2366_s4 = sld [smem:[#allocation23_spill]] }
  0x17   : > { %s255_s14 = sshll.u32 %s2363_s3, 4  ;;  %s1889_s10 = smov [#allocation7]   ;;  %s256_s14 = int_to_ptr.hbm [resolvable:$true] %s255_s14 }
  0x18   : > { %s241_s18 = sshll.u32 %s2365_s2, 4  ;;  %s1391_s13 = sadd.s32 4294967294, %s1883_s27   ;;  %s242_s18 = int_to_ptr.hbm [resolvable:$true] %s241_s18 }
  0x19   : > { %1492 = dma.hbm_to_vmem [thread:$0]  (!%p1995_p6), %s228_s30, 256, %s230_s11, [#allocation6], %s2355_s21, %s2355_s21, %s2356_s22  }
  0x1a   : > { %1498 = dma.hbm_to_vmem [thread:$0]  (!%p1995_p6), %s256_s14, 512, %s258_s20, [#allocation9], %s2355_s21, %s2355_s21, %s2356_s22  }
  0x1b   : > { %s243_s30 = sshll.u32 %s1889_s10, 4  ;;  %s1890_s11 = smov [#allocation10]   ;;  %s244_s30 = int_to_ptr.vmem [resolvable:$true] %s243_s30 }
  0x1c   : > { %s269_s29 = sshll.u32 %s2366_s4, 4  ;;  %s271_s12 = sshll.u32 %s1890_s11, 4  ;;  %s270_s29 = int_to_ptr.hbm [resolvable:$true] %s269_s29  ;;  %s272_s12 = int_to_ptr.vmem [resolvable:$true] %s271_s12 }
  0x1d   : > { %1495 = dma.hbm_to_vmem [thread:$0]  (!%p1995_p6), %s242_s18, 512, %s244_s30, [#allocation6], %s2355_s21, %s2355_s21, %s2356_s22  }
  0x1e   : > { %1501 = dma.hbm_to_vmem [thread:$0]  (!%p1995_p6), %s270_s29, 512, %s272_s12, [#allocation9], %s2355_s21, %s2355_s21, %s2356_s22  }
  0x1f   : > { %s2027_s14 = sadd.s32 1, %s1883_s27   ;;  %s35_s17 = sadd.s32 1, %s1879_s26 }
  0x20   : > { %s32_s16 = ssub.s32 %s1883_s27, %s2027_s14  ;;  %p42_p8 = scmp.ne.s32.totalorder %s1879_s26, %s1875_s25 }
  0x21   : > { %p33_p7 = scmp.eq.s32.totalorder %s32_s16, 0  ;;  %p43_p9 = scmp.eq.s32.totalorder %s1883_s27, 0 }
  0x22   : > { %p48_p10 = scmp.ne.s32.totalorder %s1875_s25, %s1871_s24  ;;  %p203_p13 = scmp.eq.s32.totalorder %s1978_s8, 1 }
  0x23   : > { %s2038_s18 = scalar_select %p33_p7, %s1879_s26, %s35_s17  }
  0x24   : > { %p2040_p11 = por %p43_p9, %p42_p8  ;;  %p2046_p12 = por %p49_p1, %p48_p10 }
  0x25   : > { %2367 = sst [smem:[#allocation19_spill]] %s2038_s18  ;;  %p209_p0 = scmp.eq.s32.totalorder %s1391_s13, 1 }
  0x26   : > { %p1517_p2 = scmp.lt.s32.totalorder %s1883_s27, 2  ;;  %s2053_s20 = sand.u32 1, %s1879_s26  }
  0x27   : > { %p2055_p4 = por %p203_p13, %p42_p8  ;;  %p2059_p6 = por %p209_p0, %p48_p10 }
  0x28   : > { %s1398_s29 = sshll.u32 %s2053_s20, 3  ;;  %s1399_s10 = sshll.u32 %s1883_s27, 3 }
  0x29   : > { %s296_s12 = scalar_lea.hbm %s2347_s0, %s1399_s10  ;;  %s292_s13 = scalar_lea.vmem [#allocation2], %s1398_s29 }
  0x2a   : > { %s300_s16 = sshll.u32 %s292_s13, 4  ;;  %s298_s17 = sshll.u32 %s296_s12, 4  ;;  %s301_s16 = int_to_ptr.vmem [resolvable:$true] %s300_s16  ;;  %s299_s17 = int_to_ptr.hbm [resolvable:$true] %s298_s17 }
  0x2b   : > { %p2070_p7 = pnand %p1517_p2, %p2040_p11  ;;  %s1400_s22 = sshll.u32 %s2053_s20, 6 }
  0x2c   : > { %s289_s1 = scalar_lea.sflag [#allocation3], %s2053_s20  ;;  %s1745_s2 = sshra.s32 %s299_s17, 4  ;;  %s1746_s2 = int_to_ptr.hbm [resolvable:$true] %s1745_s2 }
  0x2d   : > { %s1747_s3 = scalar_lea.hbm %s1746_s2, 8  ;;  %p1749_p9 = pneg %p2070_p7 }
  0x2e   : > { %p1748_p8 = scmp.ne.s32.totalorder %s1746_s2, %s1747_s3  ;;  %s1752_s10 = scalar_lea.hbm %s2347_s0, 16 }
  0x2f   : > { %p1753_p11 = scmp.lt.s32.totalorder %s1746_s2, %s2347_s0  ;;  %p1754_p0 = scmp.lt.s32.totalorder %s1752_s10, %s1747_s3 }
  0x30   : > { %p1750_p10 = pnand %p1749_p9, %p1748_p8 }
  0x31   : > { %p1755_p2 = por %p1754_p0, %p1753_p11 }
  0x32   : > { %p1751_p13 = pneg %p1750_p10 }
  0x34   : > { %p1756_p5 = pnand %p1755_p2, %p1751_p13 }
  0x36   : > { %1759 = shalt.err (!%p1756_p5)
}
  0x37   : > { %1505 = dma.hbm_to_vmem [thread:$0]  (!%p2070_p7), %s299_s17, 128, %s301_s16, %s289_s1  }
  0x38   : > { %s1466_s12 = sshll.u32 %s1883_s27, 6  ;;  %s311_s13 = scalar_lea.vmem [#allocation11], %s1400_s22 }
  0x39   : > { %s319_s4 = sshll.u32 %s311_s13, 4  ;;  %s316_s15 = scalar_lea.hbm %s2353_s6, %s1466_s12  ;;  %s320_s4 = int_to_ptr.vmem [resolvable:$true] %s319_s4 }
  0x3a   : > { %s317_s30 = sshll.u32 %s316_s15, 4  ;;  %s308_s2 = scalar_lea.sflag [#allocation12], %s2053_s20  ;;  %s318_s30 = int_to_ptr.hbm [resolvable:$true] %s317_s30 }
  0x3b   : > { %s1775_s3 = sshra.s32 %s318_s30, 4  ;;  %s1782_s22 = scalar_lea.hbm %s2353_s6, 128  ;;  %s1776_s3 = int_to_ptr.hbm [resolvable:$true] %s1775_s3 }
  0x3c   : > { %s1777_s10 = scalar_lea.hbm %s1776_s3, 64  ;;  %p1783_p13 = scmp.lt.s32.totalorder %s1776_s3, %s2353_s6 }
  0x3d   : > { %p1778_p5 = scmp.ne.s32.totalorder %s1776_s3, %s1777_s10  ;;  %p1784_p11 = scmp.lt.s32.totalorder %s1782_s22, %s1777_s10 }
  0x3f   : > { %p1780_p8 = pnand %p1778_p5, %p1749_p9  ;;  %p1785_p0 = por %p1784_p11, %p1783_p13 }
  0x41   : > { %p1781_p10 = pneg %p1780_p8 }
  0x43   : > { %p1786_p2 = pnand %p1785_p0, %p1781_p10 }
  0x45   : > { %1789 = shalt.err (!%p1786_p2)
}
  0x46   : > { %s2373_s18 = smov 8   ;;  %s2374_s20 = smov 128  }
  0x47   : > { %1508 = dma.hbm_to_vmem [thread:$0]  (!%p2070_p7), %s318_s30, 1024, %s320_s4, %s308_s2, %s2374_s20, %s2374_s20, %s2373_s18  }
  0x48   : > { %331 = sbr.rel (%p1983_p3) target bundleno = 2215 (0x8a7), region = 48  ;;  %s2111_s12 = sand.u32 (!%p1983_p3), 1, %s1875_s25  }
  0x49   : > { %s1404_s13 = sshll.u32 (!%p1983_p3), %s2111_s12, 3  ;;  %s334_s29 = scalar_lea.sflag (!%p1983_p3), [#allocation3], %s2111_s12 }
  0x4a   : > { %s337_s15 = scalar_lea.vmem (!%p1983_p3), [#allocation2], %s1404_s13 }
  0x4d   : > { %1850 = dma.done.wait (%p2046_p12), %s334_s29, 128  }
  0x4e   : > { %1852 = vsyncadd (%p2046_p12), %s334_s29, 4294967168 }
  0x4f   : > { %1854 = dma.done.wait (%p49_p1), [#allocation6], 768  }
  0x50   : > { %1856 = vsyncadd (%p49_p1), [#allocation6], 4294966528 }
  0x51   : > { %1858 = dma.done.wait (%p49_p1), [#allocation9], 1024  }
  0x52   : > { %1860 = vsyncadd (%p49_p1), [#allocation9], 4294966272  ;;  %s1409_s4 = sshll.u32 %s2111_s12, 6  ;;  %s364_s9 = scalar_lea.sflag [#allocation12], %s2111_s12 }
  0x53   : > { %s2131_s21 = scalar_lea.vmem [#allocation11], %s1409_s4 }
  0x54   : > { %1862 = dma.done.wait (%p2046_p12), %s364_s9, 1024  }
  0x55   : > { %1864 = vsyncadd (%p2046_p12), %s364_s9, 4294966272  ;;  %v438_v0 = vld [vmem:[#allocation8 + $0x18] sm:$0xff]  ;;  %v437_v1 = vld [vmem:[#allocation8 + $0x10] sm:$0xff]  ;;  %vm409_vm0 = vcmask 261120   ;;  %vm468_vm1 = vcmask 31744   ;;  %s1891_s19 = smov 124   ;;  %v505_v19 = vlaneseq }
  0x56   : > { %457 = vmatpush.msra.mxu1 %v438_v0  ;;  %v408_v2 = vld [vmem:[#allocation7 + $0x18] sm:$0xff]  ;;  %v436_v3 = vld [vmem:[#allocation8 + $0x8] sm:$0xff]  ;;  %v407_v4 = vld [vmem:[#allocation7 + $0x10] sm:$0xff]  ;;  %vm501_vm2 = vcmask 130048   ;;  %s1892_s30 = smov 120   ;;  %s1893_s2 = smov 116  }
  0x57   : > { %425 = vmatpush.msra.mxu0 %v408_v2  ;;  %v406_v5 = vld [vmem:[#allocation7 + $0x8] sm:$0xff]  ;;  %v435_v6 = vld [vmem:[#allocation8] sm:$0xff]  ;;  %v433_v7 = vld [vmem:[#allocation5] sm:$0xff]  ;;  %v2156_v20 = vand.u32 127, %v505_v19  ;;  %s1894_s3 = smov 108   ;;  %s1895_s10 = smov 96  }
  0x58   : > { %458 = vmatpush.msra.mxu1 %v437_v1  ;;  %v405_v8 = vld [vmem:[#allocation7] sm:$0xff]  ;;  %v434_v10 = vld [vmem:[#allocation5 + $0x8] sm:$0xff]  ;;  %s1896_s1 = smov 112   ;;  %v1897_v43 = vmov 0.0   ;;  %v1422_v49 = vld [vmem:[%s2131_s21 + $0x8] sm:$0xff]  ;;  %s1898_s16 = smov 92  }
  0x59   : > { %426 = vmatpush.msra.mxu0 %v407_v4  ;;  %v404_v9 = vld [vmem:[%s337_s15] sm:$0xff]  ;;  %s1899_s22 = smov 104   ;;  %s1900_s17 = smov 100  }
  0x5a   : > { %459 = vmatpush.msra.mxu1 %v436_v3  ;;  %v499_v15 = vld [vmem:[%s2131_s21] sm:$0xff]  ;;  %s1901_s11 = smov 88   ;;  %s1902_s18 = smov 80  }
  0x5b   : > { %427 = vmatpush.msra.mxu0 %v406_v5  ;;  %s1903_s20 = smov 76   ;;  %s1904_s29 = smov 72  }
  0x5c   : > { %460 = vmatpush.msra.mxu1 %v435_v6  ;;  %s1905_s15 = smov 84   ;;  %s1906_s4 = smov 68  }
  0x5d   : > { %1412 = vmatmul.msk.f32.vlgmr.msra.gmra.mxu1 %vm409_vm0, %v433_v7  ;;  %428 = vmatpush.msra.mxu0 %v405_v8  ;;  %v1428_v7 = vld [vmem:[%s2131_s21 + $0x10] sm:$0xff]  ;;  %s1907_s9 = smov 4  }
  0x5e   : > { %1411 = vmatmul.msk.f32.vlgmr.msra.gmra.mxu0 %vm409_vm0, %v404_v9 }
  0x65   : > { %1413 = vmatmul.msk.f32.gmra.mxu1 %vm409_vm0, %v434_v10 }
  0xda   : > { %v2140_v11 = vpop.f32.mrf.mxu1 }
  0xdb   : > { %v2149_v13 = vpop.f32.mrf.mxu0 }
  0xe2   : > { %v2142_v12 = vpop.f32.mrf.mxu1 }
  0xe3   : > { %560 = vrot.lane.b32.xlu2 %v2142_v12, %s1891_s19  ;;  %1414 = vmatpush.xpose.msk.msra.mxu2 %vm468_vm1, %v2142_v12  ;;  %v2173_v31 = vpack.i.bf16 %v2140_v11, %v2142_v12 }
  0xe7   : > { %1415 = vmatpush.xpose.msk.msra.mxu2 %vm468_vm1, %v2140_v11 }
  0xea   : > { %1416 = vmatmul.msk.f32.vlgmr.msra.gmra.mxu2 %vm468_vm1, %v2149_v13 }
  0xeb   : > { %558 = vrot.lane.b32.xlu2 %v2140_v11, %s1891_s19 }
 0x13d   : > { %v561_v39 = vpop.permute.xlu2 %560 }
 0x145   : > { %v559_v46 = vpop.permute.xlu2 %558 }
 0x16d   : > { %v495_v14 = vpop.f32.mrf.mxu2 }
 0x16e   : > { %v498_v16 = vmul.f32 0.5, %v495_v14 }
 0x170   : > { %v500_v17 = vadd.f32 %v499_v15, %v498_v16 }
 0x172   : > { %v502_v18 = vsel %vm501_vm2, %v500_v17, -inf }
 0x173   : > { %503 = vmax.xlane.f32.xlu0 %v502_v18  ;;  %v1440_v18 = vld [vmem:[%s2131_s21 + $0x20] sm:$0xff] }
 0x1e6   : > { %v504_v21 = vpop.xlane.xlu0 %503 }
 0x1e7   : > { %vm507_vm3 = vcmp.eq.f32.partialorder %v500_v17, %v504_v21 }
 0x1e8   : > { %v508_v22 = vsel %vm507_vm3, %v2156_v20, 16 }
 0x1e9   : > { %v509_v23 = vsel %vm501_vm2, %v508_v22, 2147483647 }
 0x1ea   : > { %v511_v24 = vshra.s32 %v509_v23, 16  ;;  %v510_v26 = vand.u32 65535, %v509_v23 }
 0x1ec   : > { %v513_v25 = vcvt.s32.f32 %v511_v24  ;;  %v512_v28 = vcvt.s32.f32 %v510_v26 }
 0x1ee   : > { %514 = vmin.xlane.f32.xlu0 %v513_v25 }
 0x202   : > { %556 = vrot.lane.b32.xlu0 %v2149_v13, %s1891_s19  ;;  %s1909_s19 = smov 16  }
 0x20a   : > { %648 = vrot.lane.b32.xlu0 %v2142_v12, %s1892_s30 }
 0x212   : > { %646 = vrot.lane.b32.xlu0 %v2140_v11, %s1892_s30 }
 0x21a   : > { %736 = vrot.lane.b32.xlu0 %v2142_v12, %s1893_s2 }
 0x222   : > { %912 = vrot.lane.b32.xlu0 %v2142_v12, %s1894_s3 }
 0x22a   : > { %908 = vrot.lane.b32.xlu0 %v2149_v13, %s1894_s3 }
 0x261   : > { %v515_v27 = vpop.xlane.xlu0 %514 }
 0x262   : > { %vm516_vm4 = vcmp.eq.f32.partialorder %v513_v25, %v515_v27  ;;  %v521_v35 = vcvt.f32.s32 %v515_v27 }
 0x263   : > { %v517_v29 = vsel %vm516_vm4, %v512_v28, inf }
 0x264   : > { %518 = vmin.xlane.f32.xlu1 %v517_v29  ;;  %v522_v37 = vshll.u32 %v521_v35, 16 }
 0x274   : > { %v557_v30 = vpop.permute.xlu0 %556 }
 0x27c   : > { %v649_v32 = vpop.permute.xlu0 %648 }
 0x27d   : > { %1425 = vmatpush.xpose.msk.msrb.mxu2 %vm468_vm1, %v649_v32  ;;  %1585 = vrot.lane.b32.xlu1 %v2173_v31, %s1895_s10  ;;  %s1913_s10 = smov 24  }
 0x284   : > { %v647_v33 = vpop.permute.xlu0 %646 }
 0x285   : > { %1426 = vmatpush.xpose.msk.msrb.mxu2 %vm468_vm1, %v647_v33  ;;  %824 = vrot.lane.b32.xlu1 %v2142_v12, %s1896_s1 }
 0x28c   : > { %v737_v62 = vpop.permute.xlu0 %736 }
 0x294   : > { %v913_v22 = vpop.permute.xlu0 %912 }
 0x2d7   : > { %v519_v34 = vpop.xlane.xlu1 %518 }
 0x2d8   : > { %v520_v36 = vcvt.f32.s32 %v519_v34 }
 0x2da   : > { %v523_v38 = vadd.s32 %v522_v37, %v520_v36 }
 0x2dc   : > { %vm524_vm5 = vcmp.eq.s32.totalorder %v2156_v20, %v523_v38 }
 0x2dd   : > { %v1417_v44 = vsel %vm524_vm5, 1.0, %v1897_v43 }
 0x2ef   : > { %v1586_v40 = vpop.permute.xlu1 %1585 }
 0x2f0   : > { %v1587_v41 = vunpack.i.l.bf16 %v1586_v40  ;;  %v1588_v42 = vunpack.i.h.bf16 %v1586_v40  ;;  %v1452_v40 = vld [vmem:[%s2131_s21 + $0x30] sm:$0xff] }
 0x2f2   : > { %550 = vmatpush.msra.mxu3 %v1587_v41 }
 0x2f4   : > { %551 = vmatpush.msra.mxu3 %v1588_v42 }
 0x2f5   : > { %1418 = vmatmul.msk.f32.vlgmr.msra.gmra.mxu3 %vm501_vm2, %v1417_v44 }
 0x2f6   : > { %1419 = vmatpush.xpose.msk.msrb.mxu3 %vm468_vm1, %v561_v39 }
 0x2f7   : > { %v825_v45 = vpop.permute.xlu1 %824 }
 0x2f8   : > { %1437 = vmatpush.xpose.msk.msra.mxu2 %vm468_vm1, %v825_v45 }
 0x2fa   : > { %1420 = vmatpush.xpose.msk.msrb.mxu3 %vm468_vm1, %v559_v46 }
 0x2fd   : > { %1421 = vmatmul.msk.f32.vlgmr.msrb.gmra.mxu3 %vm468_vm1, %v557_v30 }
 0x378   : > { %v2187_v47 = vpop.f32.mrf.mxu3 }
 0x380   : > { %v585_v48 = vpop.f32.mrf.mxu3 }
 0x381   : > { %v588_v50 = vmul.f32 0.5, %v585_v48  ;;  %v1434_v48 = vld [vmem:[%s2131_s21 + $0x18] sm:$0xff] }
 0x383   : > { %v591_v51 = vadd.f32 %v1422_v49, %v588_v50 }
 0x385   : > { %v592_v52 = vsel %vm501_vm2, %v591_v51, -inf }
 0x386   : > { %593 = vmax.xlane.f32.xlu2 %v592_v52 }
 0x39e   : > { %644 = vrot.lane.b32.xlu2 %v2149_v13, %s1892_s30  ;;  %s1910_s30 = smov 12  }
 0x3a6   : > { %1590 = vrot.lane.b32.xlu2 %v2173_v31, %s1898_s16 }
 0x3ae   : > { %822 = vrot.lane.b32.xlu2 %v2140_v11, %s1896_s1 }
 0x3b6   : > { %820 = vrot.lane.b32.xlu2 %v2149_v13, %s1896_s1  ;;  %s1463_s1 = sshll.u32 %s1978_s8, 3  ;;  %s1245_s8 = scalar_lea.sflag [#allocation4], %s2111_s12 }
 0x3be   : > { %734 = vrot.lane.b32.xlu2 %v2140_v11, %s1893_s2 }
 0x3c6   : > { %998 = vrot.lane.b32.xlu2 %v2140_v11, %s1899_s22 }
 0x3ce   : > { %910 = vrot.lane.b32.xlu2 %v2140_v11, %s1894_s3  ;;  %s1912_s3 = smov 28  }
 0x3d6   : > { %1086 = vrot.lane.b32.xlu2 %v2140_v11, %s1900_s17 }
 0x3f9   : > { %v594_v53 = vpop.xlane.xlu2 %593 }
 0x3fa   : > { %vm595_vm6 = vcmp.eq.f32.partialorder %v591_v51, %v594_v53  ;;  %v1446_v53 = vld [vmem:[%s2131_s21 + $0x28] sm:$0xff] }
 0x3fb   : > { %v596_v54 = vsel %vm595_vm6, %v2156_v20, 16 }
 0x3fc   : > { %v597_v55 = vsel %vm501_vm2, %v596_v54, 2147483647 }
 0x3fd   : > { %v599_v56 = vshra.s32 %v597_v55, 16  ;;  %v598_v2 = vand.u32 65535, %v597_v55 }
 0x3ff   : > { %v601_v57 = vcvt.s32.f32 %v599_v56  ;;  %v600_v4 = vcvt.s32.f32 %v598_v2 }
 0x401   : > { %602 = vmin.xlane.f32.xlu1 %v601_v57  ;;  %v645_v58 = vpop.permute.xlu2 %644 }
 0x402   : > { %1427 = vmatmul.msk.f32.vlgmr.msrb.gmra.mxu2 %vm468_vm1, %v645_v58 }
 0x409   : > { %v1591_v59 = vpop.permute.xlu2 %1590 }
 0x40a   : > { %v1592_v60 = vunpack.i.l.bf16 %v1591_v59  ;;  %v1593_v61 = vunpack.i.h.bf16 %v1591_v59 }
 0x40c   : > { %638 = vmatpush.msrb.mxu0 %v1592_v60 }
 0x40e   : > { %639 = vmatpush.msrb.mxu0 %v1593_v61  ;;  %v1458_v61 = vld [vmem:[%s2131_s21 + $0x38] sm:$0xff]  ;;  %s1908_s21 = smov 8  }
 0x410   : > { %1431 = vmatpush.xpose.msk.msra.mxu0 %vm468_vm1, %v737_v62 }
 0x411   : > { %v823_v63 = vpop.permute.xlu2 %822 }
 0x412   : > { %1438 = vmatpush.xpose.msk.msra.mxu2 %vm468_vm1, %v823_v63 }
 0x419   : > { %v821_v0 = vpop.permute.xlu2 %820 }
 0x41a   : > { %1000 = vrot.lane.b32.xlu1 %v2142_v12, %s1899_s22  ;;  %1439 = vmatmul.msk.f32.vlgmr.msra.gmra.mxu2 %vm468_vm1, %v821_v0 }
 0x421   : > { %v735_v1 = vpop.permute.xlu2 %734 }
 0x422   : > { %732 = vrot.lane.b32.xlu1 %v2149_v13, %s1893_s2  ;;  %1432 = vmatpush.xpose.msk.msra.mxu0 %vm468_vm1, %v735_v1  ;;  %s1911_s2 = smov 20  }
 0x42a   : > { %996 = vrot.lane.b32.xlu1 %v2149_v13, %s1899_s22 }
 0x432   : > { %1088 = vrot.lane.b32.xlu1 %v2142_v12, %s1900_s17  ;;  %v999_v12 = vpop.permute.xlu2 %998 }
 0x43a   : > { %v911_v29 = vpop.permute.xlu2 %910 }
 0x442   : > { %v1087_v32 = vpop.permute.xlu2 %1086 }
 0x474   : > { %v603_v3 = vpop.xlane.xlu1 %602 }
 0x475   : > { %vm604_vm7 = vcmp.eq.f32.partialorder %v601_v57, %v603_v3  ;;  %v609_v23 = vcvt.f32.s32 %v603_v3 }
 0x476   : > { %v605_v5 = vsel %vm604_vm7, %v600_v4, inf }
 0x477   : > { %606 = vmin.xlane.f32.xlu0 %v605_v5  ;;  %v610_v25 = vshll.u32 %v609_v23, 16 }
 0x485   : > { %v673_v6 = vpop.f32.mrf.mxu2 }
 0x486   : > { %v676_v8 = vmul.f32 0.5, %v673_v6 }
 0x488   : > { %v679_v9 = vadd.f32 %v1428_v7, %v676_v8 }
 0x48a   : > { %v680_v10 = vsel %vm501_vm2, %v679_v9, -inf }
 0x48b   : > { %1084 = vrot.lane.b32.xlu0 %v2149_v13, %s1900_s17  ;;  %681 = vmax.xlane.f32.xlu1 %v680_v10  ;;  %v909_v13 = vpop.permute.xlu0 %908  ;;  %s1255_s17 = scalar_lea.hbm %s2354_s7, %s1463_s1 }
 0x48c   : > { %v1001_v11 = vpop.permute.xlu1 %1000 }
 0x48d   : > { %1449 = vmatpush.xpose.msk.msrb.mxu2 %vm468_vm1, %v1001_v11 }
 0x491   : > { %1450 = vmatpush.xpose.msk.msrb.mxu2 %vm468_vm1, %v999_v12 }
 0x494   : > { %v733_v14 = vpop.permute.xlu1 %732 }
 0x49c   : > { %v997_v15 = vpop.permute.xlu1 %996 }
 0x49d   : > { %1451 = vmatmul.msk.f32.vlgmr.msrb.gmra.mxu2 %vm468_vm1, %v997_v15  ;;  %v849_v16 = vpop.f32.mrf.mxu2 }
 0x49e   : > { %v852_v17 = vmul.f32 0.5, %v849_v16 }
 0x4a0   : > { %v855_v19 = vadd.f32 %v1440_v18, %v852_v17 }
 0x4a2   : > { %v856_v21 = vsel %vm501_vm2, %v855_v19, -inf }
 0x4a4   : > { %v1089_v30 = vpop.permute.xlu1 %1088 }
 0x4b5   : > { %857 = vmax.xlane.f32.xlu0 %v856_v21 }
 0x4ea   : > { %v607_v24 = vpop.xlane.xlu0 %606 }
 0x4eb   : > { %v608_v26 = vcvt.f32.s32 %v607_v24 }
 0x4ed   : > { %v611_v27 = vadd.s32 %v610_v25, %v608_v26 }
 0x4ef   : > { %vm612_vm8 = vcmp.eq.s32.totalorder %v2156_v20, %v611_v27 }
 0x4f0   : > { %v1423_v28 = vsel %vm612_vm8, 1.0, %v1897_v43 }
 0x4f1   : > { %1424 = vmatmul.msk.f32.vlgmr.msrb.gmra.mxu0 %vm501_vm2, %v1423_v28 }
 0x4f2   : > { %1443 = vmatpush.xpose.msk.msrb.mxu0 %vm468_vm1, %v913_v22 }
 0x4f6   : > { %1444 = vmatpush.xpose.msk.msrb.mxu0 %vm468_vm1, %v911_v29 }
 0x4f9   : > { %1433 = vmatmul.msk.f32.vlgmr.msra.gmra.mxu0 %vm468_vm1, %v733_v14 }
 0x4fa   : > { %1455 = vmatpush.xpose.msk.msra.mxu0 %vm468_vm1, %v1089_v30 }
 0x4fd   : > { %v1085_v38 = vpop.permute.xlu0 %1084 }
 0x4fe   : > { %1456 = vmatpush.xpose.msk.msra.mxu0 %vm468_vm1, %v1087_v32  ;;  %v682_v33 = vpop.xlane.xlu1 %681 }
 0x4ff   : > { %vm683_vm9 = vcmp.eq.f32.partialorder %v679_v9, %v682_v33 }
 0x500   : > { %v684_v34 = vsel %vm683_vm9, %v2156_v20, 16 }
 0x501   : > { %v685_v35 = vsel %vm501_vm2, %v684_v34, 2147483647  ;;  %1445 = vmatmul.msk.f32.vlgmr.msrb.gmra.mxu0 %vm468_vm1, %v909_v13 }
 0x502   : > { %v687_v36 = vshra.s32 %v685_v35, 16  ;;  %v686_v59 = vand.u32 65535, %v685_v35 }
 0x504   : > { %v689_v37 = vcvt.s32.f32 %v687_v36  ;;  %v688_v1 = vcvt.s32.f32 %v686_v59 }
 0x506   : > { %690 = vmin.xlane.f32.xlu1 %v689_v37 }
 0x509   : > { %1457 = vmatmul.msk.f32.vlgmr.msra.gmra.mxu0 %vm468_vm1, %v1085_v38 }
 0x520   : > { %v1025_v39 = vpop.f32.mrf.mxu2 }
 0x521   : > { %v1028_v41 = vmul.f32 0.5, %v1025_v39 }
 0x523   : > { %v1031_v42 = vadd.f32 %v1452_v40, %v1028_v41 }
 0x525   : > { %v1032_v44 = vsel %vm501_vm2, %v1031_v42, -inf }
 0x526   : > { %1033 = vmax.xlane.f32.xlu2 %v1032_v44 }
 0x528   : > { %v858_v56 = vpop.xlane.xlu0 %857 }
 0x529   : > { %vm859_vm10 = vcmp.eq.f32.partialorder %v855_v19, %v858_v56 }
 0x52a   : > { %v860_v63 = vsel %vm859_vm10, %v2156_v20, 16 }
 0x52b   : > { %v861_v2 = vsel %vm501_vm2, %v860_v63, 2147483647 }
 0x52c   : > { %v863_v5 = vshra.s32 %v861_v2, 16  ;;  %v862_v23 = vand.u32 65535, %v861_v2 }
 0x52e   : > { %v865_v6 = vcvt.s32.f32 %v863_v5  ;;  %v864_v27 = vcvt.s32.f32 %v862_v23 }
 0x56e   : > { %v2241_v45 = vpop.f32.mrf.mxu0 }
 0x576   : > { %v761_v46 = vpop.f32.mrf.mxu0 }
 0x577   : > { %v764_v49 = vmul.f32 0.5, %v761_v46 }
 0x579   : > { %v767_v50 = vadd.f32 %v1434_v48, %v764_v49  ;;  %v2247_v58 = vpop.xlane.xlu1 %690 }
 0x57a   : > { %vm692_vm11 = vcmp.eq.f32.partialorder %v689_v37, %v2247_v58  ;;  %v697_v36 = vcvt.f32.s32 %v2247_v58 }
 0x57b   : > { %v768_v51 = vsel %vm501_vm2, %v767_v50, -inf  ;;  %v693_v4 = vsel %vm692_vm11, %v688_v1, inf }
 0x57c   : > { %769 = vmax.xlane.f32.xlu2 %v768_v51  ;;  %v698_v41 = vshll.u32 %v697_v36, 16 }
 0x57e   : > { %v937_v52 = vpop.f32.mrf.mxu0 }
 0x57f   : > { %v940_v54 = vmul.f32 0.5, %v937_v52 }
 0x581   : > { %v943_v55 = vadd.f32 %v1446_v53, %v940_v54 }
 0x583   : > { %v944_v57 = vsel %vm501_vm2, %v943_v55, -inf }
 0x584   : > { %945 = vmax.xlane.f32.xlu1 %v944_v57 }
 0x586   : > { %v1113_v60 = vpop.f32.mrf.mxu0 }
 0x587   : > { %v1116_v62 = vmul.f32 0.5, %v1113_v60 }
 0x589   : > { %v1119_v0 = vadd.f32 %v1458_v61, %v1116_v62 }
 0x58b   : > { %v1120_v3 = vsel %vm501_vm2, %v1119_v0, -inf }
 0x58c   : > { %1121 = vmax.xlane.f32.xlu0 %v1120_v3  ;;  %694 = vmin.xlane.f32.xlu1 %v693_v4 }
 0x594   : > { %866 = vmin.xlane.f32.xlu0 %v865_v6 }
 0x599   : > { %v1034_v7 = vpop.xlane.xlu2 %1033 }
 0x59a   : > { %vm1035_vm12 = vcmp.eq.f32.partialorder %v1031_v42, %v1034_v7 }
 0x59b   : > { %v1036_v8 = vsel %vm1035_vm12, %v2156_v20, 16 }
 0x59c   : > { %v2256_v9 = vsel %vm501_vm2, %v1036_v8, 2147483647 }
 0x59d   : > { %v1039_v10 = vshra.s32 %v2256_v9, 16  ;;  %v1038_v3 = vand.u32 65535, %v2256_v9 }
 0x59f   : > { %v2259_v11 = vcvt.s32.f32 %v1039_v10  ;;  %v1040_v5 = vcvt.s32.f32 %v1038_v3 }
 0x5a1   : > { %1042 = vmin.xlane.f32.xlu2 %v2259_v11 }
 0x5ef   : > { %v770_v12 = vpop.xlane.xlu2 %769 }
 0x5f0   : > { %vm771_vm13 = vcmp.eq.f32.partialorder %v767_v50, %v770_v12 }
 0x5f1   : > { %v772_v14 = vsel %vm771_vm13, %v2156_v20, 16 }
 0x5f2   : > { %v773_v15 = vsel %vm501_vm2, %v772_v14, 2147483647 }
 0x5f3   : > { %v775_v16 = vshra.s32 %v773_v15, 16  ;;  %v774_v34 = vand.u32 65535, %v773_v15 }
 0x5f5   : > { %v777_v17 = vcvt.s32.f32 %v775_v16  ;;  %v776_v38 = vcvt.s32.f32 %v774_v34 }
 0x5f7   : > { %778 = vmin.xlane.f32.xlu2 %v777_v17  ;;  %v946_v19 = vpop.xlane.xlu1 %945 }
 0x5f8   : > { %vm947_vm15 = vcmp.eq.f32.partialorder %v943_v55, %v946_v19 }
 0x5f9   : > { %v948_v25 = vsel %vm947_vm15, %v2156_v20, 16  ;;  %vm1203_vm15 = vcmask 97280  }
 0x5fa   : > { %v949_v28 = vsel %vm501_vm2, %v948_v25, 2147483647 }
 0x5fb   : > { %v951_v30 = vshra.s32 %v949_v28, 16  ;;  %v950_v55 = vand.u32 65535, %v949_v28 }
 0x5fd   : > { %v953_v32 = vcvt.s32.f32 %v951_v30  ;;  %v952_v57 = vcvt.s32.f32 %v950_v55 }
 0x5ff   : > { %v1122_v18 = vpop.xlane.xlu0 %1121  ;;  %v695_v35 = vpop.xlane.xlu1 %694 }
 0x600   : > { %vm1123_vm14 = vcmp.eq.f32.partialorder %v1119_v0, %v1122_v18  ;;  %v696_v39 = vcvt.f32.s32 %v695_v35 }
 0x601   : > { %v1124_v21 = vsel %vm1123_vm14, %v2156_v20, 16  ;;  %vm1201_vm14 = vcmask 64512  }
 0x602   : > { %v1125_v22 = vsel %vm501_vm2, %v1124_v21, 2147483647  ;;  %v699_v42 = vadd.s32 %v698_v41, %v696_v39 }
 0x603   : > { %v1127_v13 = vshra.s32 %v1125_v22, 16  ;;  %v1126_v49 = vand.u32 65535, %v1125_v22 }
 0x604   : > { %vm700_vm5 = vcmp.eq.s32.totalorder %v2156_v20, %v699_v42 }
 0x605   : > { %v1129_v24 = vcvt.s32.f32 %v1127_v13  ;;  %v1429_v50 = vsel %vm700_vm5, 1.0, %v1897_v43  ;;  %v1128_v52 = vcvt.s32.f32 %v1126_v49  ;;  %vm1210_vm5 = vcmask 228352  }
 0x607   : > { %1130 = vmin.xlane.f32.xlu0 %v1129_v24  ;;  %v867_v26 = vpop.xlane.xlu0 %866 }
 0x608   : > { %vm868_vm3 = vcmp.eq.f32.partialorder %v865_v6, %v867_v26  ;;  %v873_v59 = vcvt.f32.s32 %v867_v26 }
 0x609   : > { %v869_v29 = vsel %vm868_vm3, %v864_v27, inf  ;;  %vm1206_vm3 = vcmask 162816  }
 0x60a   : > { %870 = vmin.xlane.f32.xlu1 %v869_v29  ;;  %v874_v61 = vshll.u32 %v873_v59, 16 }
 0x60f   : > { %1595 = vrot.lane.b32.xlu2 %v2173_v31, %s1901_s11 }
 0x612   : > { %954 = vmin.xlane.f32.xlu1 %v953_v32 }
 0x614   : > { %v2272_v33 = vpop.xlane.xlu2 %1042 }
 0x615   : > { %vm1044_vm9 = vcmp.eq.f32.partialorder %v2259_v11, %v2272_v33 }
 0x616   : > { %v1045_v6 = vsel %vm1044_vm9, %v1040_v5, inf }
 0x62b   : > { %1605 = vrot.lane.b32.xlu1 %v2173_v31, %s1902_s18 }
 0x633   : > { %1610 = vrot.lane.b32.xlu1 %v2173_v31, %s1903_s20  ;;  %s403_s20 = scalar_lea.vmem [#allocation13], %s1404_s13  ;;  %s1825_s13 = scalar_lea.hbm %s2354_s7, 16 }
 0x63b   : > { %1615 = vrot.lane.b32.xlu1 %v2173_v31, %s1904_s29  ;;  %s1257_s29 = sshll.u32 %s403_s20, 4  ;;  %s1258_s29 = int_to_ptr.vmem [resolvable:$true] %s1257_s29 }
 0x66a   : > { %v779_v37 = vpop.xlane.xlu2 %778 }
 0x66b   : > { %vm780_vm4 = vcmp.eq.f32.partialorder %v777_v17, %v779_v37  ;;  %v785_v12 = vcvt.f32.s32 %v779_v37 }
 0x66c   : > { %v781_v40 = vsel %vm780_vm4, %v776_v38, inf  ;;  %v1049_v38 = vcvt.f32.s32 %v2272_v33  ;;  %vm1208_vm4 = vcmask 195584  }
 0x66d   : > { %782 = vmin.xlane.f32.xlu0 %v781_v40  ;;  %v786_v15 = vshll.u32 %v785_v12, 16 }
 0x66e   : > { %v1050_v40 = vshll.u32 %v1049_v38, 16 }
 0x672   : > { %v1596_v44 = vpop.permute.xlu2 %1595 }
 0x673   : > { %v1597_v46 = vunpack.i.l.bf16 %v1596_v44  ;;  %v1598_v48 = vunpack.i.h.bf16 %v1596_v44 }
 0x675   : > { %726 = vmatpush.msra.mxu3 %v1597_v46 }
 0x677   : > { %727 = vmatpush.msra.mxu3 %v1598_v48 }
 0x678   : > { %1430 = vmatmul.msk.f32.vlgmr.msra.gmra.mxu3 %vm501_vm2, %v1429_v50 }
 0x67a   : > { %v2278_v51 = vpop.xlane.xlu0 %1130 }
 0x67b   : > { %vm1132_vm6 = vcmp.eq.f32.partialorder %v1129_v24, %v2278_v51  ;;  %v1137_v24 = vcvt.f32.s32 %v2278_v51  ;;  %v1214_v51 = vld [vmem:[#allocation10 + $0x10] sm:$0xff] }
 0x67c   : > { %v1133_v53 = vsel %vm1132_vm6, %v1128_v52, inf  ;;  %v1212_v52 = vld [vmem:[#allocation10] sm:$0xff] }
 0x67d   : > { %1134 = vmin.xlane.f32.xlu1 %v1133_v53  ;;  %v871_v54 = vpop.xlane.xlu1 %870  ;;  %v1138_v29 = vshll.u32 %v1137_v24, 16 }
 0x67e   : > { %v872_v60 = vcvt.f32.s32 %v871_v54 }
 0x680   : > { %v875_v62 = vadd.s32 %v874_v61, %v872_v60 }
 0x681   : > { %1600 = vrot.lane.b32.xlu0 %v2173_v31, %s1905_s15  ;;  %s1259_s15 = sshll.u32 %s1255_s17, 4  ;;  %s1260_s15 = int_to_ptr.hbm [resolvable:$true] %s1259_s15 }
 0x682   : > { %vm876_vm8 = vcmp.eq.s32.totalorder %v2156_v20, %v875_v62 }
 0x683   : > { %v1441_v2 = vsel %vm876_vm8, 1.0, %v1897_v43 }
 0x685   : > { %v955_v56 = vpop.xlane.xlu1 %954 }
 0x686   : > { %vm956_vm7 = vcmp.eq.f32.partialorder %v953_v32, %v955_v56  ;;  %v961_v18 = vcvt.f32.s32 %v955_v56 }
 0x687   : > { %v957_v58 = vsel %vm956_vm7, %v952_v57, inf }
 0x688   : > { %958 = vmin.xlane.f32.xlu2 %v957_v58  ;;  %v962_v25 = vshll.u32 %v961_v18, 16 }
 0x69d   : > { %v1606_v63 = vpop.permute.xlu1 %1605 }
 0x69e   : > { %v1607_v0 = vunpack.i.l.bf16 %v1606_v63  ;;  %v1608_v1 = vunpack.i.h.bf16 %v1606_v63 }
 0x6a0   : > { %1620 = vrot.lane.b32.xlu2 %v2173_v31, %s1906_s4  ;;  %902 = vmatpush.msrb.mxu3 %v1607_v0  ;;  %s1819_s4 = sshra.s32 %s1260_s15, 4  ;;  %s1820_s4 = int_to_ptr.hbm [resolvable:$true] %s1819_s4 }
 0x6a1   : > { %p1826_p7 = scmp.lt.s32.totalorder %s1820_s4, %s2354_s7 }
 0x6a2   : > { %903 = vmatpush.msrb.mxu3 %v1608_v1 }
 0x6a3   : > { %1442 = vmatmul.msk.f32.vlgmr.msrb.gmra.mxu3 %vm501_vm2, %v1441_v2 }
 0x6a5   : > { %v1611_v4 = vpop.permute.xlu1 %1610 }
 0x6a6   : > { %v1612_v19 = vunpack.i.l.bf16 %v1611_v4  ;;  %v1613_v22 = vunpack.i.h.bf16 %v1611_v4 }
 0x6ab   : > { %1046 = vmin.xlane.f32.xlu0 %v1045_v6 }
 0x6ad   : > { %v1616_v7 = vpop.permute.xlu1 %1615 }
 0x6ae   : > { %v1617_v8 = vunpack.i.l.bf16 %v1616_v7  ;;  %v1618_v10 = vunpack.i.h.bf16 %v1616_v7 }
 0x6b0   : > { %1078 = vmatpush.msra.mxu3 %v1617_v8 }
 0x6b2   : > { %1079 = vmatpush.msra.mxu3 %v1618_v10 }
 0x6bf   : > { %1173 = vrot.lane.b32.xlu0 %v2241_v45, %s1907_s9  ;;  %s1821_s9 = scalar_lea.hbm %s1820_s4, 8 }
 0x6c0   : > { %p1822_p1 = scmp.ne.s32.totalorder %s1820_s4, %s1821_s9  ;;  %p1827_p9 = scmp.lt.s32.totalorder %s1825_s13, %s1821_s9 }
 0x6c2   : > { %p1823_p3 = pnand %p1822_p1, %p2055_p4  ;;  %p1828_p5 = por %p1827_p9, %p1826_p7 }
 0x6c4   : > { %p1824_p12 = pneg %p1823_p3 }
 0x6c6   : > { %p1829_p8 = pnand %p1828_p5, %p1824_p12 }
 0x6e0   : > { %v783_v31 = vpop.xlane.xlu0 %782 }
 0x6e1   : > { %v784_v14 = vcvt.f32.s32 %v783_v31 }
 0x6e3   : > { %v787_v9 = vadd.s32 %v786_v15, %v784_v14 }
 0x6e5   : > { %vm788_vm10 = vcmp.eq.s32.totalorder %v2156_v20, %v787_v9 }
 0x6e6   : > { %v1435_v21 = vsel %vm788_vm10, 1.0, %v1897_v43 }
 0x6f0   : > { %v1135_v45 = vpop.xlane.xlu1 %1134 }
 0x6f1   : > { %v1136_v27 = vcvt.f32.s32 %v1135_v45 }
 0x6f3   : > { %v1601_v16 = vpop.permute.xlu0 %1600  ;;  %v1139_v32 = vadd.s32 %v1138_v29, %v1136_v27 }
 0x6f4   : > { %v1602_v17 = vunpack.i.l.bf16 %v1601_v16  ;;  %v1603_v11 = vunpack.i.h.bf16 %v1601_v16 }
 0x6f5   : > { %vm1140_vm12 = vcmp.eq.s32.totalorder %v2156_v20, %v1139_v32 }
 0x6f6   : > { %814 = vmatpush.msrb.mxu1 %v1602_v17  ;;  %v1459_v37 = vsel %vm1140_vm12, 1.0, %v1897_v43 }
 0x6f8   : > { %815 = vmatpush.msrb.mxu1 %v1603_v11 }
 0x6f9   : > { %1436 = vmatmul.msk.f32.vlgmr.msrb.gmra.mxu1 %vm501_vm2, %v1435_v21 }
 0x6fa   : > { %990 = vmatpush.msra.mxu1 %v1612_v19 }
 0x6fb   : > { %v959_v13 = vpop.xlane.xlu2 %958  ;;  %v729_v23 = vpop.f32.mrf.mxu3 }
 0x6fc   : > { %991 = vmatpush.msra.mxu1 %v1613_v22  ;;  %v960_v26 = vcvt.f32.s32 %v959_v13  ;;  %1177 = vrot.lane.b32.xlu2 %v729_v23, %s1908_s21 }
 0x6fe   : > { %v963_v28 = vadd.s32 %v962_v25, %v960_v26 }
 0x700   : > { %vm964_vm11 = vcmp.eq.s32.totalorder %v2156_v20, %v963_v28 }
 0x701   : > { %v1447_v30 = vsel %vm964_vm11, 1.0, %v1897_v43 }
 0x702   : > { %1448 = vmatmul.msk.f32.vlgmr.msra.gmra.mxu1 %vm501_vm2, %v1447_v30 }
 0x703   : > { %v1621_v34 = vpop.permute.xlu2 %1620 }
 0x704   : > { %v1622_v35 = vunpack.i.l.bf16 %v1621_v34  ;;  %v1623_v36 = vunpack.i.h.bf16 %v1621_v34 }
 0x706   : > { %1166 = vmatpush.msrb.mxu1 %v1622_v35 }
 0x708   : > { %1167 = vmatpush.msrb.mxu1 %v1623_v36 }
 0x70a   : > { %1460 = vmatmul.msk.f32.vlgmr.msrb.gmra.mxu1 %vm501_vm2, %v1459_v37 }
 0x71e   : > { %v1047_v39 = vpop.xlane.xlu0 %1046 }
 0x71f   : > { %v1048_v41 = vcvt.f32.s32 %v1047_v39 }
 0x721   : > { %v1051_v42 = vadd.s32 %v1050_v40, %v1048_v41 }
 0x723   : > { %vm1052_vm13 = vcmp.eq.s32.totalorder %v2156_v20, %v1051_v42  ;;  %v1215_v20 = vld [vmem:[#allocation10 + $0x18] sm:$0xff] }
 0x724   : > { %v1453_v44 = vsel %vm1052_vm13, 1.0, %v1897_v43  ;;  %1235 = vmatpush.msra.mxu2 %v1215_v20  ;;  %v1213_v43 = vld [vmem:[#allocation10 + $0x8] sm:$0xff] }
 0x725   : > { %1454 = vmatmul.msk.f32.vlgmr.msra.gmra.mxu3 %vm501_vm2, %v1453_v44 }
 0x726   : > { %v905_v46 = vpop.f32.mrf.mxu3  ;;  %1236 = vmatpush.msra.mxu2 %v1214_v51 }
 0x727   : > { %1185 = vrot.lane.b32.xlu1 %v905_v46, %s1909_s19 }
 0x728   : > { %1237 = vmatpush.msra.mxu2 %v1213_v43 }
 0x72a   : > { %1238 = vmatpush.msra.mxu2 %v1212_v52 }
 0x731   : > { %v1174_v53 = vpop.permute.xlu0 %1173 }
 0x732   : > { %v1200_v57 = vsel %vm468_vm1, %v2187_v47, %v1174_v53  ;;  %v1624_v47 = vld [vmem:[%s2352_s5] ss:$0 sm:$0xff] }
 0x756   : > { %v1178_v54 = vpop.permute.xlu2 %1177 }
 0x757   : > { %v1202_v58 = vsel %vm1201_vm14, %v1200_v57, %v1178_v54 }
 0x776   : > { %v817_v48 = vpop.f32.mrf.mxu1 }
 0x777   : > { %1181 = vrot.lane.b32.xlu0 %v817_v48, %s1910_s30 }
 0x77f   : > { %v993_v49 = vpop.f32.mrf.mxu1 }
 0x780   : > { %1189 = vrot.lane.b32.xlu2 %v993_v49, %s1911_s2 }
 0x787   : > { %v1169_v33 = vpop.f32.mrf.mxu1 }
 0x788   : > { %1197 = vrot.lane.b32.xlu2 %v1169_v33, %s1912_s3 }
 0x799   : > { %v1186_v60 = vpop.permute.xlu1 %1185 }
 0x7a8   : > { %v1081_v50 = vpop.f32.mrf.mxu3 }
 0x7a9   : > { %1193 = vrot.lane.b32.xlu0 %v1081_v50, %s1913_s10 }
 0x7da   : > { %v1190_v55 = vpop.permute.xlu2 %1189 }
 0x7e2   : > { %v1198_v0 = vpop.permute.xlu2 %1197 }
 0x7e9   : > { %v1182_v56 = vpop.permute.xlu0 %1181 }
 0x7ea   : > { %v1204_v59 = vsel %vm1203_vm15, %v1202_v58, %v1182_v56 }
 0x7eb   : > { %v1205_v61 = vsel %vm501_vm2, %v1204_v59, %v1186_v60 }
 0x7ec   : > { %v1207_v62 = vsel %vm1206_vm3, %v1205_v61, %v1190_v55 }
 0x81b   : > { %v1194_v63 = vpop.permute.xlu0 %1193 }
 0x81c   : > { %v1209_v1 = vsel %vm1208_vm4, %v1207_v62, %v1194_v63 }
 0x81d   : > { %v1211_v2 = vsel %vm1210_vm5, %v1209_v1, %v1198_v0 }
 0x81e   : > { %1461 = vmatmul.msk.f32.vlgmr.msra.gmra.mxu2 %vm409_vm0, %v1211_v2 }
 0x8a1   : > { %v1240_v3 = vpop.f32.mrf.mxu2 }
 0x8a2   : > { %v1241_v4 = vadd.f32 %v1624_v47, %v1240_v3 }
 0x8a4   : > { %1243 = vst.msk [vmem:[%s403_s20] sm:$0xff] %vm409_vm0, %v1241_v4 }
 0x8a5   : > { %1832 = shalt.err (!%p1829_p8)
}
 0x8a6   : > { %1487 = dma.vmem_to_hbm [thread:$0]  (%p2055_p4), %s1258_s29, 128, %s1260_s15, %s1245_s8  }
 0x8a7 PF: > { %s1271_s12 = sand.u32 1, %s1871_s24   ;;  %p2375_p10 = scmp.ge.s32.totalorder %s1883_s27, 2 }
 0x8a8   : > { %s1272_s3 = scalar_lea.sflag [#allocation4], %s1271_s12 }
 0x8a9   : > { %p1510_p13 = pnand %p2375_p10, %p2059_p6 }
 0x8ab   : > { %p1511_p11 = pneg %p1510_p13 }
 0x8ad   : > { %1866 = dma.done.wait (%p1511_p11), %s1272_s3, 128  }
 0x8ae   : > { %1868 = vsyncadd (%p1511_p11), %s1272_s3, 4294967168  ;;  %s2376_s10 = sld [smem:[#allocation19_spill]]  ;;  %p25_p0 = scmp.ge.s32.totalorder %s2027_s14, 4  }
 0x8af   : > { %s2377_s24 = smov %s1875_s25  ;;  %s2378_s25 = smov %s1879_s26 }
 0x8b0   : > { %s2380_s27 = smov %s2027_s14  ;;  %27 = sbr.rel (!%p25_p0) target bundleno = 14 (0xe), region = 129 }
 0x8b4   : > { %s2379_s26 = smov %s2376_s10 }
 0x8b5   :  { %1278 = vsyncpa [#allocation3], 1 }
 0x8b6   :  { %1280 = vsyncpa [#allocation3 + $0x1], 1 }
 0x8b7   :  { %1281 = vsyncpa [#allocation6], 1 }
 0x8b8   :  { %1282 = vsyncpa [#allocation9], 1 }
 0x8b9   :  { %1283 = vsyncpa [#allocation12], 1 }
 0x8ba   :  { %1285 = vsyncpa [#allocation12 + $0x1], 1 }
 0x8bb   :  { %1286 = vsyncpa [#allocation4], 1 }
 0x8bc   :  { %1288 = vsyncpa [#allocation4 + $0x1], 1 }

</bundles_post_ra>
